<compile_context>
chip_gen: v7x
topology: tpu7x:2x2x1
jax: 0.10.0
libtpu: 0.0.40
codegen_flags: <defaults>
</compile_context>

<pallas_src>
import functools
import math

import jax
import jax.numpy as jnp
from jax.experimental import pallas as pl
from jax.experimental.pallas import tpu as pltpu

LANE = 128
SUBLANE = 8


def _ru(n: int, m: int) -> int:
    return ((n + m - 1) // m) * m


def _pad2d(x, rows, cols):
    r, c = x.shape
    return jnp.pad(x, ((0, rows - r), (0, cols - c)))


# ----------------------------------------------------------------------------- kernel
def _fused_forward_kernel(x_ref, enc_w0_ref, enc_b0_ref, enc_w_ref, enc_b_ref,
                          hw0_in_ref, hw0_lat_ref, hb0_ref, head_w_ref, head_b_ref,
                          out_ref, *, n_enc, n_head, enc_acts, actor_acts, critic_acts,
                          a_max, compute_dtype):
    """Fully-fused ActorCriticAmpTs forward.

    x_ref:        [TB, IN_PAD]  packed (obs | priv | terr), compute_dtype, zero-padded.
    enc_*:        fused block-diagonal priv|terr encoder (layer0 + stacked rest).
    hw0_*, head_*: stacked actor|critic trunk (actor lanes [0:a_max], critic [a_max:]).
    out_ref:      [TB, HEAD_W]  f32: action mean in lanes [0:num_actions],
                                     value in lane [a_max].
    Padded lanes/rows are zero and elu/tanh(0)==0, so padding stays zero throughout.
    """
    cd = compute_dtype
    x = x_ref[...]

    def act(y, name):                       # f32 epilogue (VPU/EUP-friendly on v5e too)
        if name == "elu":
            # exp(min(y,0))-1 (not expm1) — identical within tolerance; exp lowers to EUP.
            return jnp.where(y > 0.0, y, jnp.exp(jnp.minimum(y, 0.0)) - 1.0)
        if name == "relu":
            return jnp.maximum(y, 0.0)
        if name == "tanh":
            return jnp.tanh(y)
        return y                            # "none"

    # ---- fused (block-diagonal) privileged + terrain encoders: one dot per layer
    h = jnp.dot(x, enc_w0_ref[...], preferred_element_type=jnp.float32) + enc_b0_ref[...]
    h = act(h, enc_acts[0])
    for l in range(n_enc - 1):
        h = (jnp.dot(h.astype(cd), enc_w_ref[l], preferred_element_type=jnp.float32)
             + enc_b_ref[l])
        h = act(h, enc_acts[l + 1])
    lat = h.astype(cd)                      # teacher latent in lanes [0:priv_lat+terr_lat]

    # ---- stacked actor|critic trunk
    def head_act(y, l):
        a_name, c_name = actor_acts[l], critic_acts[l]
        if a_name == c_name:
            return act(y, a_name)
        lane = jax.lax.broadcasted_iota(jnp.int32, y.shape, 1)
        return jnp.where(lane < a_max, act(y, a_name), act(y, c_name))

    y = (jnp.dot(x, hw0_in_ref[...], preferred_element_type=jnp.float32)
         + jnp.dot(lat, hw0_lat_ref[...], preferred_element_type=jnp.float32)
         + hb0_ref[...])
    h = head_act(y, 0)
    for l in range(n_head - 1):
        y = (jnp.dot(h.astype(cd), head_w_ref[l], preferred_element_type=jnp.float32)
             + head_b_ref[l])
        h = head_act(y, l + 1)

    out_ref[...] = h.astype(out_ref.dtype)


# ----------------------------------------------------------------------------- module
class ActorCriticAmpTsPallas:
    """Teacher forward of ActorCriticAmpTs (measure_heights_in_sim=True):
       mean  = actor(cat(obs, priv_enc(priv[:, :39]), terr_enc(priv[:, 39:])))
       value = critic(same input)
    ELU activations, tanh after the penultimate actor layer (activation_output)."""

    # TODO(synk): the recurrent Memory (LSTM) path, adaptation_module /
    # student_latent_encoder distillation heads and Normal log-prob/entropy are not
    # Pallas kernels here; sampling is done with jax.random outside the kernel.

    def __init__(self, num_obs, num_privileged_obs, num_terrain_obs, num_actions,
                 actor_hidden_dims=(128, 64, 32), critic_hidden_dims=(128, 64, 32),
                 privileged_encoder_hidden_dims=(64, 32),
                 terrain_encoder_hidden_dims=(64, 32),
                 privileged_encoder_latent_dims=8, terrain_encoder_latent_dims=16,
                 init_noise_std=1.0, compute_dtype=jnp.bfloat16, key=None):
        assert key is not None
        self.compute_dtype = compute_dtype
        self.num_obs = num_obs
        self.num_actions = num_actions
        self.num_priv_part = num_privileged_obs - num_terrain_obs  # == 39 in the spec
        self.num_terrain_obs = num_terrain_obs
        teacher_latent = privileged_encoder_latent_dims + terrain_encoder_latent_dims
        self.teacher_latent = teacher_latent

        # layer dims / per-linear activations, mirroring the PyTorch constructor
        self.priv_dims = [self.num_priv_part] + list(privileged_encoder_hidden_dims) \
            + [privileged_encoder_latent_dims]
        self.terr_dims = [num_terrain_obs] + list(terrain_encoder_hidden_dims) \
            + [terrain_encoder_latent_dims]
        self.priv_acts = tuple(["elu"] * len(privileged_encoder_hidden_dims) + ["none"])
        self.terr_acts = tuple(["elu"] * len(terrain_encoder_hidden_dims) + ["none"])
        assert len(self.priv_dims) == len(self.terr_dims), "encoder fusion needs equal depth"
        assert self.priv_acts == self.terr_acts

        self.actor_dims = [num_obs + teacher_latent] + list(actor_hidden_dims) + [num_actions]
        self.critic_dims = [num_obs + teacher_latent] + list(critic_hidden_dims) + [1]
        self.actor_acts = tuple(["elu"] * (len(actor_hidden_dims) - 1) + ["tanh", "none"])
        self.critic_acts = tuple(["elu"] * len(critic_hidden_dims) + ["none"])
        assert len(self.actor_dims) == len(self.critic_dims), "head stacking needs equal depth"

        self.n_enc = len(self.priv_dims) - 1
        self.n_head = len(self.actor_dims) - 1
        assert self.n_enc >= 2 and self.n_head >= 2

        # ---- padded lane geometry
        self.in_pad = _ru(num_obs + num_privileged_obs, LANE)      # packed obs|priv|terr
        fused_widths = [self.priv_dims[l] + self.terr_dims[l] for l in range(1, self.n_enc + 1)]
        self.enc_w = _ru(max(fused_widths), LANE)                  # fused encoder lane width
        assert teacher_latent <= self.enc_w
        self.a_max = _ru(max(self.actor_dims[1:]), LANE)           # actor lane block
        self.c_max = _ru(max(self.critic_dims[1:]), LANE)          # critic lane block
        self.head_w = self.a_max + self.c_max                      # stacked trunk width

        # ---- raw (unpadded, f32) parameters — also used by the pure-JAX reference
        def init_linear(k, in_dim, out_dim):
            k1, k2 = jax.random.split(k)
            bound = 1.0 / math.sqrt(in_dim)
            w = jax.random.uniform(k1, (in_dim, out_dim), jnp.float32, -bound, bound)
            b = jax.random.uniform(k2, (out_dim,), jnp.float32, -bound, bound)
            return w, b

        def init_mlp(k, dims):
            params = []
            for i in range(len(dims) - 1):
                k, sub = jax.random.split(k)
                params.append(init_linear(sub, dims[i], dims[i + 1]))
            return k, params

        key, self.priv_params = init_mlp(key, self.priv_dims)
        key, self.terr_params = init_mlp(key, self.terr_dims)
        key, self.actor_params = init_mlp(key, self.actor_dims)
        key, self.critic_params = init_mlp(key, self.critic_dims)
        self.std = init_noise_std * jnp.ones((num_actions,), jnp.float32)

        # ---- packed / padded parameters (lane-dense, weights in compute_dtype, f32 biases)
        cd = compute_dtype
        z = lambda shape: jnp.zeros(shape, jnp.float32)

        # fused block-diagonal encoder: layer 0 maps the packed input
        pw0, pb0 = self.priv_params[0]
        tw0, tb0 = self.terr_params[0]
        p1, t1 = self.priv_dims[1], self.terr_dims[1]
        ew0 = z((self.in_pad, self.enc_w))
        ew0 = ew0.at[num_obs:num_obs + self.num_priv_part, 0:p1].set(pw0)
        ew0 = ew0.at[num_obs + self.num_priv_part:
                     num_obs + self.num_priv_part + num_terrain_obs, p1:p1 + t1].set(tw0)
        eb0 = z((1, self.enc_w))
        eb0 = eb0.at[0, 0:p1].set(pb0).at[0, p1:p1 + t1].set(tb0)

        enc_w_rest, enc_b_rest = [], []
        for l in range(1, self.n_enc):
            pw, pb = self.priv_params[l]
            tw, tb = self.terr_params[l]
            pi, ti = self.priv_dims[l], self.terr_dims[l]
            po, to = self.priv_dims[l + 1], self.terr_dims[l + 1]
            w = z((self.enc_w, self.enc_w))
            w = w.at[0:pi, 0:po].set(pw)
            w = w.at[pi:pi + ti, po:po + to].set(tw)
            b = z((1, self.enc_w))
            b = b.at[0, 0:po].set(pb).at[0, po:po + to].set(tb)
            enc_w_rest.append(w)
            enc_b_rest.append(b)
        enc_w_rest = jnp.stack(enc_w_rest)          # [n_enc-1, ENC_W, ENC_W]
        enc_b_rest = jnp.stack(enc_b_rest)          # [n_enc-1, 1, ENC_W]

        # stacked actor|critic head: actor lanes [0:a_max], critic lanes [a_max:head_w]
        aw0, ab0 = self.actor_params[0]
        cw0, cb0 = self.critic_params[0]
        a1, c1 = self.actor_dims[1], self.critic_dims[1]
        hw0_in = z((self.in_pad, self.head_w))       # obs rows only; priv/terr rows stay 0
        hw0_in = hw0_in.at[0:num_obs, 0:a1].set(aw0[:num_obs])
        hw0_in = hw0_in.at[0:num_obs, self.a_max:self.a_max + c1].set(cw0[:num_obs])
        hw0_lat = z((self.enc_w, self.head_w))       # latent rows only
        hw0_lat = hw0_lat.at[0:teacher_latent, 0:a1].set(aw0[num_obs:])
        hw0_lat = hw0_lat.at[0:teacher_latent, self.a_max:self.a_max + c1].set(cw0[num_obs:])
        hb0 = z((1, self.head_w))
        hb0 = hb0.at[0, 0:a1].set(ab0).at[0, self.a_max:self.a_max + c1].set(cb0)

        head_ws, head_bs = [], []
        for l in range(1, self.n_head):
            aw, ab = self.actor_params[l]
            cw, cb = self.critic_params[l]
            ai, ci = self.actor_dims[l], self.critic_dims[l]
            ao, co = self.actor_dims[l + 1], self.critic_dims[l + 1]
            w = z((self.head_w, self.head_w))
            w = w.at[0:ai, 0:ao].set(aw)
            w = w.at[self.a_max:self.a_max + ci, self.a_max:self.a_max + co].set(cw)
            b = z((1, self.head_w))
            b = b.at[0, 0:ao].set(ab).at[0, self.a_max:self.a_max + co].set(cb)
            head_ws.append(w)
            head_bs.append(b)
        head_w_stack = jnp.stack(head_ws)            # [n_head-1, HEAD_W, HEAD_W]
        head_b_stack = jnp.stack(head_bs)            # [n_head-1, 1, HEAD_W]

        self.padded_params = (
            ew0.astype(cd), eb0,
            enc_w_rest.astype(cd), enc_b_rest,
            hw0_in.astype(cd), hw0_lat.astype(cd), hb0,
            head_w_stack.astype(cd), head_b_stack,
        )

        # jit the whole forward once (no per-layer Python dispatch)
        self._forward = jax.jit(self._forward_impl)

    # ------------------------------------------------------------------ fused forward
    def _forward_impl(self, padded_params, observations, privileged_observations):
        cd = self.compute_dtype
        B = observations.shape[0]

        # batch tile: minimize padding, cap at 1024 rows, and use >=2 grid steps at
        # large batch so ("parallel",) can shard across both v7x TensorCores.
        B8 = _ru(B, SUBLANE)
        if B8 <= 256:
            TB = B8
        else:
            n_tiles = max(2, pl.cdiv(B8, 1024))
            TB = _ru(pl.cdiv(B8, n_tiles), SUBLANE)
        B_p = _ru(B8, TB)

        # pack obs|priv|terr into ONE lane-dense input tile (single streamed DMA)
        packed = jnp.concatenate([observations, privileged_observations], axis=-1)
        packed = _pad2d(packed, B_p, self.in_pad).astype(cd)

        inputs = (packed,) + tuple(padded_params)

        def resident(a):                    # weights/biases: loaded once, stay in VMEM
            nd = a.ndim
            return pl.BlockSpec(a.shape, lambda i, _nd=nd: (0,) * _nd)

        in_specs = [pl.BlockSpec((TB, self.in_pad), lambda i: (i, 0))]
        in_specs += [resident(a) for a in padded_params]
        out_specs = pl.BlockSpec((TB, self.head_w), lambda i: (i, 0))
        out_shape = jax.ShapeDtypeStruct((B_p, self.head_w), jnp.float32)

        kernel = functools.partial(
            _fused_forward_kernel,
            n_enc=self.n_enc, n_head=self.n_head,
            enc_acts=self.priv_acts,
            actor_acts=self.actor_acts, critic_acts=self.critic_acts,
            a_max=self.a_max, compute_dtype=cd)

        # advisory scheduling hint
        flops = 2 * B_p * (self.in_pad * self.enc_w
                           + (self.n_enc - 1) * self.enc_w * self.enc_w
                           + self.in_pad * self.head_w
                           + self.enc_w * self.head_w
                           + (self.n_head - 1) * self.head_w * self.head_w)
        trans = B_p * (self.n_enc * self.enc_w + self.n_head * self.head_w)
        pbytes = sum(int(a.size) * a.dtype.itemsize for a in padded_params)
        bytes_accessed = (pbytes + int(packed.size) * packed.dtype.itemsize
                          + B_p * self.head_w * 4)

        out = pl.pallas_call(
            kernel,
            out_shape=out_shape,
            grid=(B_p // TB,),
            in_specs=in_specs,
            out_specs=out_specs,
            compiler_params=pltpu.CompilerParams(
                dimension_semantics=("parallel",)),
            cost_estimate=pl.CostEstimate(
                flops=int(flops), transcendentals=int(trans),
                bytes_accessed=int(bytes_accessed)),
        )(*inputs)

        mean = out[:B, :self.num_actions]
        value = out[:B, self.a_max:self.a_max + 1]
        return mean, value

    # PyTorch-API-ish helpers
    def __call__(self, observations, privileged_observations):
        return self._forward(self.padded_params, observations, privileged_observations)

    def act_expert(self, observations, privileged_observations):
        return self(observations, privileged_observations)[0]

    def evaluate(self, observations, privileged_observations):
        return self(observations, privileged_observations)[1]

    def act(self, key, observations, privileged_observations):
        mean, _ = self(observations, privileged_observations)
        return mean + self.std * jax.random.normal(key, mean.shape, mean.dtype)


# ----------------------------------------------------------------------------- reference
def _ref_act(x, name):
    if name == "elu":
        return jax.nn.elu(x)
    if name == "relu":
        return jax.nn.relu(x)
    if name == "tanh":
        return jnp.tanh(x)
    return x


def _ref_mlp(x, params, acts):
    for (w, b), a in zip(params, acts):
        x = _ref_act(x @ w + b, a)
    return x


def reference_forward(model, obs, priv_obs):
    pl_ = _ref_mlp(priv_obs[:, :model.num_priv_part], model.priv_params, model.priv_acts)
    tl_ = _ref_mlp(priv_obs[:, model.num_priv_part:], model.terr_params, model.terr_acts)
    x = jnp.concatenate([obs, pl_, tl_], axis=-1)
    mean = _ref_mlp(x, model.actor_params, model.actor_acts)
    value = _ref_mlp(x, model.critic_params, model.critic_acts)
    return mean, value


# ----------------------------------------------------------------------------- main
if __name__ == "__main__":
    key = jax.random.PRNGKey(0)
    key, ko, kp, km = jax.random.split(key, 4)

    batch = 8
    num_obs = 48
    num_terrain_obs = 16
    num_privileged_obs = 39 + num_terrain_obs   # first 39 cols = privileged factors
    num_actions = 12

    obs = jax.random.normal(ko, (batch, num_obs), jnp.float32)
    priv_obs = jax.random.normal(kp, (batch, num_privileged_obs), jnp.float32)

    common = dict(
        num_obs=num_obs, num_privileged_obs=num_privileged_obs,
        num_terrain_obs=num_terrain_obs, num_actions=num_actions,
        actor_hidden_dims=(128, 64, 32), critic_hidden_dims=(128, 64, 32),
        privileged_encoder_hidden_dims=(64, 32),
        terrain_encoder_hidden_dims=(64, 32),
        privileged_encoder_latent_dims=8, terrain_encoder_latent_dims=16)

    # f32 MXU operands: exact check against the pure-JAX reference
    model = ActorCriticAmpTsPallas(**common, compute_dtype=jnp.float32, key=km)
    mean, value = jax.block_until_ready(model(obs, priv_obs))

    ref_mean, ref_value = reference_forward(model, obs, priv_obs)
    assert mean.shape == (batch, num_actions) and value.shape == (batch, 1)
    assert jnp.allclose(mean, ref_mean, atol=1e-4, rtol=1e-4), "actor mean mismatch"
    assert jnp.allclose(value, ref_value, atol=1e-4, rtol=1e-4), "critic value mismatch"

    # bf16 MXU operands + f32 accumulation (default / recommended on v6e/v7x): loose check
    model_bf16 = ActorCriticAmpTsPallas(**common, compute_dtype=jnp.bfloat16, key=km)
    mean16, value16 = jax.block_until_ready(model_bf16(obs, priv_obs))
    assert jnp.allclose(mean16, ref_mean, atol=2e-1, rtol=2e-1), "bf16 mean drifted"
    assert jnp.allclose(value16, ref_value, atol=2e-1, rtol=2e-1), "bf16 value drifted"

    print("KERNEL_OK")
</pallas_src>

<mosaic_0001>
module attributes {stable_mosaic.version = 11 : i64} {
  func.func @_fused_forward_kernel(%arg0: i32, %arg1: memref<8x128xf32, #tpu.memory_space<vmem>>, %arg2: memref<128x128xf32, #tpu.memory_space<vmem>>, %arg3: memref<1x128xf32, #tpu.memory_space<vmem>>, %arg4: memref<2x128x128xf32, #tpu.memory_space<vmem>>, %arg5: memref<2x1x128xf32, #tpu.memory_space<vmem>>, %arg6: memref<128x256xf32, #tpu.memory_space<vmem>>, %arg7: memref<128x256xf32, #tpu.memory_space<vmem>>, %arg8: memref<1x256xf32, #tpu.memory_space<vmem>>, %arg9: memref<3x256x256xf32, #tpu.memory_space<vmem>>, %arg10: memref<3x1x256xf32, #tpu.memory_space<vmem>>, %arg11: memref<8x256xf32, #tpu.memory_space<vmem>>) attributes {dimension_semantics = [#tpu.dimension_semantics<parallel>], iteration_bounds = array<i64: 1>, scalar_prefetch = 0 : i64, scratch_operands = 0 : i64, tpu.core_type = #tpu.core_type<tc>, window_params = [{transform_indices = @transform_0, window_bounds = array<i64: 8, 128>}, {pipeline_mode = #tpu.pipeline_mode<synchronous>, transform_indices = @transform_1, window_bounds = array<i64: 128, 128>}, {pipeline_mode = #tpu.pipeline_mode<synchronous>, transform_indices = @transform_2, window_bounds = array<i64: 1, 128>}, {pipeline_mode = #tpu.pipeline_mode<synchronous>, transform_indices = @transform_3, window_bounds = array<i64: 2, 128, 128>}, {pipeline_mode = #tpu.pipeline_mode<synchronous>, transform_indices = @transform_4, window_bounds = array<i64: 2, 1, 128>}, {pipeline_mode = #tpu.pipeline_mode<synchronous>, transform_indices = @transform_5, window_bounds = array<i64: 128, 256>}, {pipeline_mode = #tpu.pipeline_mode<synchronous>, transform_indices = @transform_6, window_bounds = array<i64: 128, 256>}, {pipeline_mode = #tpu.pipeline_mode<synchronous>, transform_indices = @transform_7, window_bounds = array<i64: 1, 256>}, {pipeline_mode = #tpu.pipeline_mode<synchronous>, transform_indices = @transform_8, window_bounds = array<i64: 3, 256, 256>}, {pipeline_mode = #tpu.pipeline_mode<synchronous>, transform_indices = @transform_9, window_bounds = array<i64: 3, 1, 256>}, {transform_indices = @transform_10, window_bounds = array<i64: 8, 256>}]} {
    %c0 = arith.constant 0 : index
    %c0_0 = arith.constant 0 : index
    %0 = vector.load %arg1[%c0, %c0_0] : memref<8x128xf32, #tpu.memory_space<vmem>>, vector<8x128xf32>
    %c0_1 = arith.constant 0 : index
    %c0_2 = arith.constant 0 : index
    %1 = vector.load %arg2[%c0_1, %c0_2] : memref<128x128xf32, #tpu.memory_space<vmem>>, vector<128x128xf32>
    %cst = arith.constant dense<0.000000e+00> : vector<8x128xf32>
    %2 = tpu.matmul %0, %1, %cst {dimension_numbers = #tpu.dot_dimension_numbers<[1], [0], [0], [1], [0, 0, 1, 1], [], []>} : vector<8x128xf32>, vector<128x128xf32>, vector<8x128xf32> -> vector<8x128xf32>
    %c0_3 = arith.constant 0 : index
    %c0_4 = arith.constant 0 : index
    %3 = vector.load %arg3[%c0_3, %c0_4] : memref<1x128xf32, #tpu.memory_space<vmem>>, vector<1x128xf32>
    %4 = vector.broadcast %3 : vector<1x128xf32> to vector<8x128xf32>
    %5 = arith.addf %2, %4 : vector<8x128xf32>
    %cst_5 = arith.constant 0.000000e+00 : f32
    %6 = vector.broadcast %cst_5 : f32 to vector<8x128xf32>
    %7 = arith.cmpf ogt, %5, %6 : vector<8x128xf32>
    %cst_6 = arith.constant 0.000000e+00 : f32
    %8 = vector.broadcast %cst_6 : f32 to vector<8x128xf32>
    %9 = arith.minimumf %5, %8 : vector<8x128xf32>
    %10 = math.exp %9 : vector<8x128xf32>
    %cst_7 = arith.constant 1.000000e+00 : f32
    %11 = vector.broadcast %cst_7 : f32 to vector<8x128xf32>
    %12 = arith.subf %10, %11 : vector<8x128xf32>
    %13 = arith.select %7, %5, %12 : vector<8x128xi1>, vector<8x128xf32>
    %c0_8 = arith.constant 0 : index
    %c0_9 = arith.constant 0 : index
    %c0_10 = arith.constant 0 : index
    %14 = vector.load %arg4[%c0_8, %c0_9, %c0_10] : memref<2x128x128xf32, #tpu.memory_space<vmem>>, vector<1x128x128xf32>
    %15 = vector.shape_cast %14 : vector<1x128x128xf32> to vector<128x128xf32>
    %cst_11 = arith.constant dense<0.000000e+00> : vector<8x128xf32>
    %16 = tpu.matmul %13, %15, %cst_11 {dimension_numbers = #tpu.dot_dimension_numbers<[1], [0], [0], [1], [0, 0, 1, 1], [], []>} : vector<8x128xf32>, vector<128x128xf32>, vector<8x128xf32> -> vector<8x128xf32>
    %c0_12 = arith.constant 0 : index
    %c0_13 = arith.constant 0 : index
    %c0_14 = arith.constant 0 : index
    %17 = vector.load %arg5[%c0_12, %c0_13, %c0_14] : memref<2x1x128xf32, #tpu.memory_space<vmem>>, vector<1x1x128xf32>
    %18 = vector.shape_cast %17 : vector<1x1x128xf32> to vector<1x128xf32>
    %19 = vector.broadcast %18 : vector<1x128xf32> to vector<8x128xf32>
    %20 = arith.addf %16, %19 : vector<8x128xf32>
    %cst_15 = arith.constant 0.000000e+00 : f32
    %21 = vector.broadcast %cst_15 : f32 to vector<8x128xf32>
    %22 = arith.cmpf ogt, %20, %21 : vector<8x128xf32>
    %cst_16 = arith.constant 0.000000e+00 : f32
    %23 = vector.broadcast %cst_16 : f32 to vector<8x128xf32>
    %24 = arith.minimumf %20, %23 : vector<8x128xf32>
    %25 = math.exp %24 : vector<8x128xf32>
    %cst_17 = arith.constant 1.000000e+00 : f32
    %26 = vector.broadcast %cst_17 : f32 to vector<8x128xf32>
    %27 = arith.subf %25, %26 : vector<8x128xf32>
    %28 = arith.select %22, %20, %27 : vector<8x128xi1>, vector<8x128xf32>
    %c1 = arith.constant 1 : index
    %c0_18 = arith.constant 0 : index
    %c0_19 = arith.constant 0 : index
    %29 = vector.load %arg4[%c1, %c0_18, %c0_19] : memref<2x128x128xf32, #tpu.memory_space<vmem>>, vector<1x128x128xf32>
    %30 = vector.shape_cast %29 : vector<1x128x128xf32> to vector<128x128xf32>
    %cst_20 = arith.constant dense<0.000000e+00> : vector<8x128xf32>
    %31 = tpu.matmul %28, %30, %cst_20 {dimension_numbers = #tpu.dot_dimension_numbers<[1], [0], [0], [1], [0, 0, 1, 1], [], []>} : vector<8x128xf32>, vector<128x128xf32>, vector<8x128xf32> -> vector<8x128xf32>
    %c1_21 = arith.constant 1 : index
    %c0_22 = arith.constant 0 : index
    %c0_23 = arith.constant 0 : index
    %32 = vector.load %arg5[%c1_21, %c0_22, %c0_23] : memref<2x1x128xf32, #tpu.memory_space<vmem>>, vector<1x1x128xf32>
    %33 = vector.shape_cast %32 : vector<1x1x128xf32> to vector<1x128xf32>
    %34 = vector.broadcast %33 : vector<1x128xf32> to vector<8x128xf32>
    %35 = arith.addf %31, %34 : vector<8x128xf32>
    %c0_24 = arith.constant 0 : index
    %c0_25 = arith.constant 0 : index
    %36 = vector.load %arg6[%c0_24, %c0_25] : memref<128x256xf32, #tpu.memory_space<vmem>>, vector<128x256xf32>
    %cst_26 = arith.constant dense<0.000000e+00> : vector<8x256xf32>
    %37 = tpu.matmul %0, %36, %cst_26 {dimension_numbers = #tpu.dot_dimension_numbers<[1], [0], [0], [1], [0, 0, 1, 1], [], []>} : vector<8x128xf32>, vector<128x256xf32>, vector<8x256xf32> -> vector<8x256xf32>
    %c0_27 = arith.constant 0 : index
    %c0_28 = arith.constant 0 : index
    %38 = vector.load %arg7[%c0_27, %c0_28] : memref<128x256xf32, #tpu.memory_space<vmem>>, vector<128x256xf32>
    %cst_29 = arith.constant dense<0.000000e+00> : vector<8x256xf32>
    %39 = tpu.matmul %35, %38, %cst_29 {dimension_numbers = #tpu.dot_dimension_numbers<[1], [0], [0], [1], [0, 0, 1, 1], [], []>} : vector<8x128xf32>, vector<128x256xf32>, vector<8x256xf32> -> vector<8x256xf32>
    %40 = arith.addf %37, %39 : vector<8x256xf32>
    %c0_30 = arith.constant 0 : index
    %c0_31 = arith.constant 0 : index
    %41 = vector.load %arg8[%c0_30, %c0_31] : memref<1x256xf32, #tpu.memory_space<vmem>>, vector<1x256xf32>
    %42 = vector.broadcast %41 : vector<1x256xf32> to vector<8x256xf32>
    %43 = arith.addf %40, %42 : vector<8x256xf32>
    %cst_32 = arith.constant 0.000000e+00 : f32
    %44 = vector.broadcast %cst_32 : f32 to vector<8x256xf32>
    %45 = arith.cmpf ogt, %43, %44 : vector<8x256xf32>
    %cst_33 = arith.constant 0.000000e+00 : f32
    %46 = vector.broadcast %cst_33 : f32 to vector<8x256xf32>
    %47 = arith.minimumf %43, %46 : vector<8x256xf32>
    %48 = math.exp %47 : vector<8x256xf32>
    %cst_34 = arith.constant 1.000000e+00 : f32
    %49 = vector.broadcast %cst_34 : f32 to vector<8x256xf32>
    %50 = arith.subf %48, %49 : vector<8x256xf32>
    %51 = arith.select %45, %43, %50 : vector<8x256xi1>, vector<8x256xf32>
    %c0_35 = arith.constant 0 : index
    %c0_36 = arith.constant 0 : index
    %c0_37 = arith.constant 0 : index
    %52 = vector.load %arg9[%c0_35, %c0_36, %c0_37] : memref<3x256x256xf32, #tpu.memory_space<vmem>>, vector<1x256x256xf32>
    %53 = vector.shape_cast %52 : vector<1x256x256xf32> to vector<256x256xf32>
    %cst_38 = arith.constant dense<0.000000e+00> : vector<8x256xf32>
    %54 = tpu.matmul %51, %53, %cst_38 {dimension_numbers = #tpu.dot_dimension_numbers<[1], [0], [0], [1], [0, 0, 1, 1], [], []>} : vector<8x256xf32>, vector<256x256xf32>, vector<8x256xf32> -> vector<8x256xf32>
    %c0_39 = arith.constant 0 : index
    %c0_40 = arith.constant 0 : index
    %c0_41 = arith.constant 0 : index
    %55 = vector.load %arg10[%c0_39, %c0_40, %c0_41] : memref<3x1x256xf32, #tpu.memory_space<vmem>>, vector<1x1x256xf32>
    %56 = vector.shape_cast %55 : vector<1x1x256xf32> to vector<1x256xf32>
    %57 = vector.broadcast %56 : vector<1x256xf32> to vector<8x256xf32>
    %58 = arith.addf %54, %57 : vector<8x256xf32>
    %cst_42 = arith.constant 0.000000e+00 : f32
    %59 = vector.broadcast %cst_42 : f32 to vector<8x256xf32>
    %60 = arith.cmpf ogt, %58, %59 : vector<8x256xf32>
    %cst_43 = arith.constant 0.000000e+00 : f32
    %61 = vector.broadcast %cst_43 : f32 to vector<8x256xf32>
    %62 = arith.minimumf %58, %61 : vector<8x256xf32>
    %63 = math.exp %62 : vector<8x256xf32>
    %cst_44 = arith.constant 1.000000e+00 : f32
    %64 = vector.broadcast %cst_44 : f32 to vector<8x256xf32>
    %65 = arith.subf %63, %64 : vector<8x256xf32>
    %66 = arith.select %60, %58, %65 : vector<8x256xi1>, vector<8x256xf32>
    %c1_45 = arith.constant 1 : index
    %c0_46 = arith.constant 0 : index
    %c0_47 = arith.constant 0 : index
    %67 = vector.load %arg9[%c1_45, %c0_46, %c0_47] : memref<3x256x256xf32, #tpu.memory_space<vmem>>, vector<1x256x256xf32>
    %68 = vector.shape_cast %67 : vector<1x256x256xf32> to vector<256x256xf32>
    %cst_48 = arith.constant dense<0.000000e+00> : vector<8x256xf32>
    %69 = tpu.matmul %66, %68, %cst_48 {dimension_numbers = #tpu.dot_dimension_numbers<[1], [0], [0], [1], [0, 0, 1, 1], [], []>} : vector<8x256xf32>, vector<256x256xf32>, vector<8x256xf32> -> vector<8x256xf32>
    %c1_49 = arith.constant 1 : index
    %c0_50 = arith.constant 0 : index
    %c0_51 = arith.constant 0 : index
    %70 = vector.load %arg10[%c1_49, %c0_50, %c0_51] : memref<3x1x256xf32, #tpu.memory_space<vmem>>, vector<1x1x256xf32>
    %71 = vector.shape_cast %70 : vector<1x1x256xf32> to vector<1x256xf32>
    %72 = vector.broadcast %71 : vector<1x256xf32> to vector<8x256xf32>
    %73 = arith.addf %69, %72 : vector<8x256xf32>
    %74 = tpu.iota {dimensions = array<i32: 1>} : vector<8x256xi32>
    %c128_i32 = arith.constant 128 : i32
    %75 = vector.broadcast %c128_i32 : i32 to vector<8x256xi32>
    %76 = arith.cmpi slt, %74, %75 : vector<8x256xi32>
    %77 = math.tanh %73 : vector<8x256xf32>
    %cst_52 = arith.constant 0.000000e+00 : f32
    %78 = vector.broadcast %cst_52 : f32 to vector<8x256xf32>
    %79 = arith.cmpf ogt, %73, %78 : vector<8x256xf32>
    %cst_53 = arith.constant 0.000000e+00 : f32
    %80 = vector.broadcast %cst_53 : f32 to vector<8x256xf32>
    %81 = arith.minimumf %73, %80 : vector<8x256xf32>
    %82 = math.exp %81 : vector<8x256xf32>
    %cst_54 = arith.constant 1.000000e+00 : f32
    %83 = vector.broadcast %cst_54 : f32 to vector<8x256xf32>
    %84 = arith.subf %82, %83 : vector<8x256xf32>
    %85 = arith.select %79, %73, %84 : vector<8x256xi1>, vector<8x256xf32>
    %86 = arith.select %76, %77, %85 : vector<8x256xi1>, vector<8x256xf32>
    %c2 = arith.constant 2 : index
    %c0_55 = arith.constant 0 : index
    %c0_56 = arith.constant 0 : index
    %87 = vector.load %arg9[%c2, %c0_55, %c0_56] : memref<3x256x256xf32, #tpu.memory_space<vmem>>, vector<1x256x256xf32>
    %88 = vector.shape_cast %87 : vector<1x256x256xf32> to vector<256x256xf32>
    %cst_57 = arith.constant dense<0.000000e+00> : vector<8x256xf32>
    %89 = tpu.matmul %86, %88, %cst_57 {dimension_numbers = #tpu.dot_dimension_numbers<[1], [0], [0], [1], [0, 0, 1, 1], [], []>} : vector<8x256xf32>, vector<256x256xf32>, vector<8x256xf32> -> vector<8x256xf32>
    %c2_58 = arith.constant 2 : index
    %c0_59 = arith.constant 0 : index
    %c0_60 = arith.constant 0 : index
    %90 = vector.load %arg10[%c2_58, %c0_59, %c0_60] : memref<3x1x256xf32, #tpu.memory_space<vmem>>, vector<1x1x256xf32>
    %91 = vector.shape_cast %90 : vector<1x1x256xf32> to vector<1x256xf32>
    %92 = vector.broadcast %91 : vector<1x256xf32> to vector<8x256xf32>
    %93 = arith.addf %89, %92 : vector<8x256xf32>
    %c0_61 = arith.constant 0 : index
    %c0_62 = arith.constant 0 : index
    %94 = vector.load %arg11[%c0_61, %c0_62] : memref<8x256xf32, #tpu.memory_space<vmem>>, vector<8x256xf32>
    tpu.vector_store %arg11[%c0_61, %c0_62], %93 {strides = array<i32>} : memref<8x256xf32, #tpu.memory_space<vmem>>, vector<8x256xf32>,
    return
  }
  func.func @transform_0(%arg0: i32) -> (i32, i32) {
    %c0_i32 = arith.constant 0 : i32
    %c0_i32_0 = arith.constant 0 : i32
    return %arg0, %c0_i32 : i32, i32
  }
  func.func @transform_1(%arg0: i32) -> (i32, i32) {
    %c0_i32 = arith.constant 0 : i32
    %c0_i32_0 = arith.constant 0 : i32
    %c0_i32_1 = arith.constant 0 : i32
    return %c0_i32, %c0_i32_0 : i32, i32
  }
  func.func @transform_2(%arg0: i32) -> (i32, i32) {
    %c0_i32 = arith.constant 0 : i32
    %c0_i32_0 = arith.constant 0 : i32
    %c0_i32_1 = arith.constant 0 : i32
    return %c0_i32, %c0_i32_0 : i32, i32
  }
  func.func @transform_3(%arg0: i32) -> (i32, i32, i32) {
    %c0_i32 = arith.constant 0 : i32
    %c0_i32_0 = arith.constant 0 : i32
    %c0_i32_1 = arith.constant 0 : i32
    %c0_i32_2 = arith.constant 0 : i32
    return %c0_i32, %c0_i32_0, %c0_i32_1 : i32, i32, i32
  }
  func.func @transform_4(%arg0: i32) -> (i32, i32, i32) {
    %c0_i32 = arith.constant 0 : i32
    %c0_i32_0 = arith.constant 0 : i32
    %c0_i32_1 = arith.constant 0 : i32
    %c0_i32_2 = arith.constant 0 : i32
    return %c0_i32, %c0_i32_0, %c0_i32_1 : i32, i32, i32
  }
  func.func @transform_5(%arg0: i32) -> (i32, i32) {
    %c0_i32 = arith.constant 0 : i32
    %c0_i32_0 = arith.constant 0 : i32
    %c0_i32_1 = arith.constant 0 : i32
    return %c0_i32, %c0_i32_0 : i32, i32
  }
  func.func @transform_6(%arg0: i32) -> (i32, i32) {
    %c0_i32 = arith.constant 0 : i32
    %c0_i32_0 = arith.constant 0 : i32
    %c0_i32_1 = arith.constant 0 : i32
    return %c0_i32, %c0_i32_0 : i32, i32
  }
  func.func @transform_7(%arg0: i32) -> (i32, i32) {
    %c0_i32 = arith.constant 0 : i32
    %c0_i32_0 = arith.constant 0 : i32
    %c0_i32_1 = arith.constant 0 : i32
    return %c0_i32, %c0_i32_0 : i32, i32
  }
  func.func @transform_8(%arg0: i32) -> (i32, i32, i32) {
    %c0_i32 = arith.constant 0 : i32
    %c0_i32_0 = arith.constant 0 : i32
    %c0_i32_1 = arith.constant 0 : i32
    %c0_i32_2 = arith.constant 0 : i32
    return %c0_i32, %c0_i32_0, %c0_i32_1 : i32, i32, i32
  }
  func.func @transform_9(%arg0: i32) -> (i32, i32, i32) {
    %c0_i32 = arith.constant 0 : i32
    %c0_i32_0 = arith.constant 0 : i32
    %c0_i32_1 = arith.constant 0 : i32
    %c0_i32_2 = arith.constant 0 : i32
    return %c0_i32, %c0_i32_0, %c0_i32_1 : i32, i32, i32
  }
  func.func @transform_10(%arg0: i32) -> (i32, i32) {
    %c0_i32 = arith.constant 0 : i32
    %c0_i32_0 = arith.constant 0 : i32
    return %arg0, %c0_i32 : i32, i32
  }
}

</mosaic_0001>

<bundles_post_ra>
// kernel: _forward_impl.1
= control target key start
LH: loop header
LB: loop body
LE: loop exit
PB: predicated region body
PF: predicated region fallthrough
CT: control target
= control target key end

     0   :  { %15 = vsyncpa [#allocation3], 0  ;;  %s1980_s0 = inlined_call_operand.vmem [shape: f32[8,128], index: 0, kind: input, shape index: {}]   ;;  %s1981_s1 = inlined_call_operand.hbm [shape: f32[128,128], index: 1, kind: input, shape index: {}]   ;;  %s1982_s2 = inlined_call_operand.vmem [shape: f32[1,128], index: 2, kind: input, shape index: {}]   ;;  %s1983_s3 = inlined_call_operand.hbm [shape: f32[2,128,128], index: 3, kind: input, shape index: {}]   ;;  %s1984_s4 = inlined_call_operand.vmem [shape: f32[2,1,128], index: 4, kind: input, shape index: {}]   ;;  %s1985_s5 = inlined_call_operand.hbm [shape: f32[128,256], index: 5, kind: input, shape index: {}]   ;;  %s1986_s6 = inlined_call_operand.hbm [shape: f32[128,256], index: 6, kind: input, shape index: {}]   ;;  %s1987_s7 = inlined_call_operand.vmem [shape: f32[1,256], index: 7, kind: input, shape index: {}]   ;;  %s1988_s8 = inlined_call_operand.hbm [shape: f32[3,256,256], index: 8, kind: input, shape index: {}]   ;;  %s1989_s9 = inlined_call_operand.vmem [shape: f32[3,1,256], index: 9, kind: input, shape index: {}]   ;;  %s1990_s10 = inlined_call_operand.vmem [shape: f32[8,256], index: 10, kind: output, shape index: {}]  }
   0x1   :  { %16 = vsyncpa [#allocation5], 0 }
   0x2   :  { %17 = vsyncpa [#allocation8], 0  ;;  %s1760_s13 = smov [#allocation4]   ;;  %s1644_s17 = scalar_lea.hbm %s1983_s3, 4096 }
   0x3   :  { %s39_s14 = sshll.u32 %s1760_s13, 4  ;;  %p1645_p0 = scmp.ne.s32.totalorder %s1983_s3, %s1644_s17  ;;  %s40_s14 = int_to_ptr.vmem [resolvable:$true] %s39_s14 }
   0x4   :  { %p1648_p1 = scmp.lt.u32.totalorder %s1644_s17, %s1983_s3 }
   0x6   :  { %p1650_p2 = pnand %p1648_p1, %p1645_p0 }
   0x8   :  { %1653 = shalt.err (!%p1650_p2)
}
   0x9   :  { %s1654_s22 = scalar_lea.vmem %s40_s14, 4096  ;;  %p1659_p4 = scmp.lt.s32.totalorder %s40_s14, %s40_s14 }
   0xa   :  { %p1655_p3 = scmp.ne.s32.totalorder %s40_s14, %s1654_s22  ;;  %p1660_p5 = scmp.lt.s32.totalorder %s1654_s22, %s1654_s22 }
   0xc   :  { %p1661_p6 = por %p1660_p5, %p1659_p4 }
   0xe   :  { %p1662_p7 = pnand %p1661_p6, %p1655_p3 }
  0x10   :  { %1665 = shalt.err (!%p1662_p7)
}
  0x11   :  { %s1761_s23 = smov 128   ;;  %s1762_s24 = smov 8  }
  0x12   :  { %45 = dma.hbm_to_vmem [thread:$0]  %s1983_s3, 4096, %s40_s14, [#allocation5], %s1761_s23, %s1761_s23, %s1762_s24  }
  0x13   :  { %s1763_s27 = smov [#allocation7]   ;;  %s1764_s29 = smov [#allocation2]  }
  0x14   :  { %s65_s28 = sshll.u32 %s1763_s27, 4  ;;  %s25_s30 = sshll.u32 %s1764_s29, 4  ;;  %s66_s28 = int_to_ptr.vmem [resolvable:$true] %s65_s28  ;;  %s26_s30 = int_to_ptr.vmem [resolvable:$true] %s25_s30 }
  0x15   :  { %s1666_s13 = scalar_lea.hbm %s1986_s6, 4096 }
  0x16   :  { %p1667_p8 = scmp.ne.s32.totalorder %s1986_s6, %s1666_s13  ;;  %p1670_p9 = scmp.lt.u32.totalorder %s1666_s13, %s1986_s6 }
  0x18   :  { %p1672_p10 = pnand %p1670_p9, %p1667_p8 }
  0x1a   :  { %1675 = shalt.err (!%p1672_p10)
}
  0x1b   :  { %s1676_s3 = scalar_lea.vmem %s66_s28, 4096  ;;  %p1681_p12 = scmp.lt.s32.totalorder %s66_s28, %s66_s28 }
  0x1c   :  { %p1677_p11 = scmp.ne.s32.totalorder %s66_s28, %s1676_s3  ;;  %p1682_p13 = scmp.lt.s32.totalorder %s1676_s3, %s1676_s3 }
  0x1e   :  { %p1683_p0 = por %p1682_p13, %p1681_p12 }
  0x20   :  { %p1684_p1 = pnand %p1683_p0, %p1677_p11 }
  0x22   :  { %1687 = shalt.err (!%p1684_p1)
}
  0x23   :  { %s1765_s14 = smov 256   ;;  %s1766_s19 = smov 16  }
  0x24   :  { %71 = dma.hbm_to_vmem [thread:$0]  %s1986_s6, 4096, %s66_s28, [#allocation8], %s1765_s14, %s1765_s14, %s1766_s19  }
  0x25   :  { %s1688_s26 = scalar_lea.hbm %s1981_s1, 2048 }
  0x26   :  { %p1689_p2 = scmp.ne.s32.totalorder %s1981_s1, %s1688_s26  ;;  %p1692_p3 = scmp.lt.u32.totalorder %s1688_s26, %s1981_s1 }
  0x28   :  { %p1694_p4 = pnand %p1692_p3, %p1689_p2 }
  0x2a   :  { %1697 = shalt.err (!%p1694_p4)
}
  0x2b   :  { %s1698_s13 = scalar_lea.vmem %s26_s30, 2048  ;;  %p1703_p6 = scmp.lt.s32.totalorder %s26_s30, %s26_s30 }
  0x2c   :  { %p1699_p5 = scmp.ne.s32.totalorder %s26_s30, %s1698_s13  ;;  %p1704_p7 = scmp.lt.s32.totalorder %s1698_s13, %s1698_s13 }
  0x2e   :  { %p1705_p8 = por %p1704_p7, %p1703_p6 }
  0x30   :  { %p1706_p9 = pnand %p1705_p8, %p1699_p5 }
  0x32   :  { %1709 = shalt.err (!%p1706_p9)
}
  0x33   :  { %31 = dma.hbm_to_vmem [thread:$0]  %s1981_s1, 2048, %s26_s30, [#allocation3], %s1761_s23, %s1761_s23, %s1762_s24  }
  0x34   :  { %s1767_s15 = smov [#allocation6]   ;;  %s1768_s17 = smov [#allocation9]  }
  0x35   :  { %s53_s16 = sshll.u32 %s1767_s15, 4  ;;  %s79_s18 = sshll.u32 %s1768_s17, 4  ;;  %s54_s16 = int_to_ptr.vmem [resolvable:$true] %s53_s16  ;;  %s80_s18 = int_to_ptr.vmem [resolvable:$true] %s79_s18 }
  0x36   :  { %s1710_s21 = scalar_lea.hbm %s1985_s5, 4096 }
  0x37   :  { %p1711_p10 = scmp.ne.s32.totalorder %s1985_s5, %s1710_s21  ;;  %p1714_p11 = scmp.lt.u32.totalorder %s1710_s21, %s1985_s5 }
  0x39   :  { %p1716_p12 = pnand %p1714_p11, %p1711_p10 }
  0x3b   :  { %1719 = shalt.err (!%p1716_p12)
}
  0x3c   :  { %s1720_s1 = scalar_lea.vmem %s54_s16, 4096  ;;  %p1725_p0 = scmp.lt.s32.totalorder %s54_s16, %s54_s16 }
  0x3d   :  { %p1721_p13 = scmp.ne.s32.totalorder %s54_s16, %s1720_s1  ;;  %p1726_p1 = scmp.lt.s32.totalorder %s1720_s1, %s1720_s1 }
  0x3f   :  { %p1727_p2 = por %p1726_p1, %p1725_p0 }
  0x41   :  { %p1728_p3 = pnand %p1727_p2, %p1721_p13 }
  0x43   :  { %1731 = shalt.err (!%p1728_p3)
}
  0x44   :  { %59 = dma.hbm_to_vmem [thread:$0]  %s1985_s5, 4096, %s54_s16, [#allocation5], %s1765_s14, %s1765_s14, %s1766_s19  }
  0x45   :  { %s1732_s11 = scalar_lea.hbm %s1988_s8, 24576 }
  0x46   :  { %p1733_p4 = scmp.ne.s32.totalorder %s1988_s8, %s1732_s11  ;;  %p1736_p5 = scmp.lt.u32.totalorder %s1732_s11, %s1988_s8 }
  0x48   :  { %p1738_p6 = pnand %p1736_p5, %p1733_p4 }
  0x4a   :  { %1741 = shalt.err (!%p1738_p6)
}
  0x4b   :  { %s1742_s15 = scalar_lea.vmem %s80_s18, 24576  ;;  %p1747_p8 = scmp.lt.s32.totalorder %s80_s18, %s80_s18 }
  0x4c   :  { %p1743_p7 = scmp.ne.s32.totalorder %s80_s18, %s1742_s15  ;;  %p1748_p9 = scmp.lt.s32.totalorder %s1742_s15, %s1742_s15 }
  0x4e   :  { %p1749_p10 = por %p1748_p9, %p1747_p8 }
  0x50   :  { %p1750_p11 = pnand %p1749_p10, %p1743_p7 }
  0x52   :  { %1753 = shalt.err (!%p1750_p11)
}
  0x53   :  { %85 = dma.hbm_to_vmem [thread:$0]  %s1988_s8, 24576, %s80_s18, [#allocation8], %s1765_s14, %s1765_s14, %s1766_s19  }
  0x54   :  { %1754 = dma.done.wait [#allocation3], 2048  }
  0x55   :  { %1755 = vsyncadd [#allocation3], 4294965248 }
  0x56   :  { %1756 = dma.done.wait [#allocation5], 8192  }
  0x57   :  { %1757 = vsyncadd [#allocation5], 4294959104 }
  0x58   :  { %1758 = dma.done.wait [#allocation8], 28672  }
  0x59   :  { %1759 = vsyncadd [#allocation8], 4294938624  ;;  %v1769_v0 = vmov 0.0|0.0   ;;  %vm1770_vm0 = vmmov 0   ;;  %v1771_v1 = vmov 0.0   ;;  %v104_v2 = vld [vmem:[#allocation2] sm:$0xff] }
  0x5a   :  { %1286 = vmatprep.subr.bf16.mxu0 %v1769_v0  ;;  %1213 = vmatprep.mubr.msk.f32.mxu0 %vm1770_vm0, %v1771_v1  ;;  %v105_v3 = vld [vmem:[#allocation2 + $0x8] sm:$0xff]  ;;  %v106_v4 = vld [vmem:[#allocation2 + $0x10] sm:$0xff]  ;;  %v107_v6 = vld [vmem:[#allocation2 + $0x18] sm:$0xff] }
  0x5b   :  { %1310 = vmatprep.subr.bf16.mxu1 %v1769_v0  ;;  %1248 = vmatprep.mubr.msk.f32.mxu1 %vm1770_vm0, %v1771_v1  ;;  %v1287_v5 = vpack.c.bf16 %v105_v3, %v104_v2  ;;  %v1290_v7 = vpack.c.bf16 %v107_v6, %v106_v4  ;;  %v108_v8 = vld [vmem:[#allocation2 + $0x20] sm:$0xff]  ;;  %v109_v9 = vld [vmem:[#allocation2 + $0x28] sm:$0xff]  ;;  %v205_v12 = vld [vmem:[#allocation4 + $0x10] sm:$0xff] }
  0x5c   :  { %v203_v10 = vld [vmem:[#allocation4] sm:$0xff]  ;;  %v204_v11 = vld [vmem:[#allocation4 + $0x8] sm:$0xff]  ;;  %v206_v13 = vld [vmem:[#allocation4 + $0x18] sm:$0xff]  ;;  %v1293_v14 = vpack.c.bf16 %v109_v9, %v108_v8 }
  0x5d   :  { %1288 = vmatpush3.bf16.msra.mxu0 %v1287_v5  ;;  %v1311_v15 = vpack.c.bf16 %v204_v11, %v203_v10  ;;  %v110_v16 = vld [vmem:[#allocation2 + $0x30] sm:$0xff]  ;;  %v111_v17 = vld [vmem:[#allocation2 + $0x38] sm:$0xff]  ;;  %v1314_v18 = vpack.c.bf16 %v206_v13, %v205_v12  ;;  %v207_v19 = vld [vmem:[#allocation4 + $0x20] sm:$0xff] }
  0x5e   :  { %1289 = vmatprep.subr.bf16.mxu0 %v1769_v0  ;;  %v208_v20 = vld [vmem:[#allocation4 + $0x28] sm:$0xff]  ;;  %v1296_v21 = vpack.c.bf16 %v111_v17, %v110_v16  ;;  %v112_v22 = vld [vmem:[#allocation2 + $0x40] sm:$0xff]  ;;  %v114_v26 = vld [vmem:[#allocation2 + $0x50] sm:$0xff] }
  0x5f   :  { %1312 = vmatpush3.bf16.msra.mxu1 %v1311_v15  ;;  %v113_v23 = vld [vmem:[#allocation2 + $0x48] sm:$0xff]  ;;  %v1317_v24 = vpack.c.bf16 %v208_v20, %v207_v19  ;;  %v115_v27 = vld [vmem:[#allocation2 + $0x58] sm:$0xff]  ;;  %v116_v29 = vld [vmem:[#allocation2 + $0x60] sm:$0xff] }
  0x60   :  { %1313 = vmatprep.subr.bf16.mxu1 %v1769_v0  ;;  %v1299_v25 = vpack.c.bf16 %v113_v23, %v112_v22  ;;  %v1302_v28 = vpack.c.bf16 %v115_v27, %v114_v26  ;;  %v117_v30 = vld [vmem:[#allocation2 + $0x68] sm:$0xff]  ;;  %v118_v32 = vld [vmem:[#allocation2 + $0x70] sm:$0xff]  ;;  %v119_v33 = vld [vmem:[#allocation2 + $0x78] sm:$0xff] }
  0x61   :  { %1291 = vmatpush3.bf16.msra.mxu0 %v1290_v7  ;;  %v1305_v31 = vpack.c.bf16 %v117_v30, %v116_v29  ;;  %v1308_v34 = vpack.c.bf16 %v119_v33, %v118_v32  ;;  %v1921_v35 = vld [vmem:[%s1980_s0] sm:$0xff]  ;;  %v209_v36 = vld [vmem:[#allocation4 + $0x30] sm:$0xff]  ;;  %v210_v37 = vld [vmem:[#allocation4 + $0x38] sm:$0xff] }
  0x62   :  { %1292 = vmatprep.subr.bf16.mxu0 %v1769_v0  ;;  %v1320_v38 = vpack.c.bf16 %v210_v37, %v209_v36  ;;  %v211_v39 = vld [vmem:[#allocation4 + $0x40] sm:$0xff]  ;;  %v212_v40 = vld [vmem:[#allocation4 + $0x48] sm:$0xff]  ;;  %v213_v42 = vld [vmem:[#allocation4 + $0x50] sm:$0xff] }
  0x63   :  { %1315 = vmatpush3.bf16.msra.mxu1 %v1314_v18  ;;  %v1323_v41 = vpack.c.bf16 %v212_v40, %v211_v39  ;;  %v214_v43 = vld [vmem:[#allocation4 + $0x58] sm:$0xff]  ;;  %v215_v44 = vld [vmem:[#allocation4 + $0x60] sm:$0xff]  ;;  %v216_v46 = vld [vmem:[#allocation4 + $0x68] sm:$0xff] }
  0x64   :  { %1316 = vmatprep.subr.bf16.mxu1 %v1769_v0  ;;  %v1326_v45 = vpack.c.bf16 %v214_v43, %v213_v42  ;;  %v1329_v47 = vpack.c.bf16 %v216_v46, %v215_v44  ;;  %v217_v48 = vld [vmem:[#allocation4 + $0x70] sm:$0xff]  ;;  %v218_v49 = vld [vmem:[#allocation4 + $0x78] sm:$0xff]  ;;  %v303_v51 = vld [vmem:[#allocation4 + $0x80] sm:$0xff] }
  0x65   :  { %1294 = vmatpush3.bf16.msra.mxu0 %v1293_v14  ;;  %v1332_v50 = vpack.c.bf16 %v218_v49, %v217_v48  ;;  %v304_v52 = vld [vmem:[#allocation4 + $0x88] sm:$0xff]  ;;  %v305_v53 = vld [vmem:[#allocation4 + $0x90] sm:$0xff]  ;;  %v306_v55 = vld [vmem:[#allocation4 + $0x98] sm:$0xff] }
  0x66   :  { %1295 = vmatprep.subr.bf16.mxu0 %v1769_v0  ;;  %v1335_v54 = vpack.c.bf16 %v304_v52, %v303_v51  ;;  %v1338_v56 = vpack.c.bf16 %v306_v55, %v305_v53  ;;  %v307_v57 = vld [vmem:[#allocation4 + $0xa0] sm:$0xff]  ;;  %v308_v58 = vld [vmem:[#allocation4 + $0xa8] sm:$0xff]  ;;  %v309_v7 = vld [vmem:[#allocation4 + $0xb0] sm:$0xff] }
  0x67   :  { %1318 = vmatpush3.bf16.msra.mxu1 %v1317_v24  ;;  %v1341_v59 = vpack.c.bf16 %v308_v58, %v307_v57  ;;  %v1116_v60 = vld [vmem:[%s1982_s2] ss:$0 sm:$0xff]  ;;  %v310_v8 = vld [vmem:[#allocation4 + $0xb8] sm:$0xff]  ;;  %v312_v11 = vld [vmem:[#allocation4 + $0xc8] sm:$0xff] }
  0x68   :  { %1319 = vmatprep.subr.bf16.mxu1 %v1769_v0  ;;  %v1344_v9 = vpack.c.bf16 %v310_v8, %v309_v7  ;;  %v311_v10 = vld [vmem:[#allocation4 + $0xc0] sm:$0xff]  ;;  %v313_v13 = vld [vmem:[#allocation4 + $0xd0] sm:$0xff]  ;;  %v314_v14 = vld [vmem:[#allocation4 + $0xd8] sm:$0xff] }
  0x69   :  { %1297 = vmatpush3.bf16.msra.mxu0 %v1296_v21  ;;  %v1347_v12 = vpack.c.bf16 %v312_v11, %v311_v10  ;;  %v315_v15 = vld [vmem:[#allocation4 + $0xe0] sm:$0xff]  ;;  %v1350_v16 = vpack.c.bf16 %v314_v14, %v313_v13  ;;  %v316_v17 = vld [vmem:[#allocation4 + $0xe8] sm:$0xff]  ;;  %v317_v19 = vld [vmem:[#allocation4 + $0xf0] sm:$0xff] }
  0x6a   :  { %1298 = vmatprep.subr.bf16.mxu0 %v1769_v0  ;;  %v1353_v18 = vpack.c.bf16 %v316_v17, %v315_v15  ;;  %v318_v20 = vld [vmem:[#allocation4 + $0xf8] sm:$0xff]  ;;  %v430_v22 = vld [vmem:[#allocation7 + $0x8] sm:$0xff]  ;;  %v429_v24 = vld [vmem:[#allocation7] sm:$0xff] }
  0x6b   :  { %1321 = vmatpush3.bf16.msra.mxu1 %v1320_v38  ;;  %v1356_v21 = vpack.c.bf16 %v318_v20, %v317_v19  ;;  %v432_v23 = vld [vmem:[#allocation7 + $0x18] sm:$0xff]  ;;  %v431_v26 = vld [vmem:[#allocation7 + $0x10] sm:$0xff]  ;;  %v434_v27 = vld [vmem:[#allocation7 + $0x28] sm:$0xff] }
  0x6c   :  { %1322 = vmatprep.subr.bf16.mxu1 %v1769_v0  ;;  %v1360_v29 = vpack.c.bf16 %v431_v26, %v429_v24  ;;  %v435_v32 = vld [vmem:[#allocation7 + $0x30] sm:$0xff]  ;;  %v438_v33 = vld [vmem:[#allocation7 + $0x48] sm:$0xff]  ;;  %v444_v40 = vld [vmem:[#allocation7 + $0x78] sm:$0xff] }
  0x6d   :  { %1300 = vmatpush3.bf16.msra.mxu0 %v1299_v25  ;;  %v1358_v25 = vpack.c.bf16 %v432_v23, %v430_v22  ;;  %v439_v38 = vld [vmem:[#allocation7 + $0x50] sm:$0xff]  ;;  %v442_v39 = vld [vmem:[#allocation7 + $0x68] sm:$0xff]  ;;  %v441_v43 = vld [vmem:[#allocation7 + $0x60] sm:$0xff] }
  0x6e   :  { %1301 = vmatprep.subr.bf16.mxu0 %v1769_v0  ;;  %v1370_v42 = vpack.c.bf16 %v444_v40, %v442_v39  ;;  %v443_v44 = vld [vmem:[#allocation7 + $0x70] sm:$0xff]  ;;  %v448_v46 = vld [vmem:[#allocation7 + $0x98] sm:$0xff]  ;;  %v445_v49 = vld [vmem:[#allocation7 + $0x80] sm:$0xff] }
  0x6f   :  { %1324 = vmatpush3.bf16.msra.mxu1 %v1323_v41  ;;  %v450_v51 = vld [vmem:[#allocation7 + $0xa8] sm:$0xff]  ;;  %v452_v52 = vld [vmem:[#allocation7 + $0xb8] sm:$0xff]  ;;  %v449_v55 = vld [vmem:[#allocation7 + $0xa0] sm:$0xff] }
  0x70   :  { %1325 = vmatprep.subr.bf16.mxu1 %v1769_v0  ;;  %v454_v57 = vld [vmem:[#allocation7 + $0xc8] sm:$0xff]  ;;  %v456_v58 = vld [vmem:[#allocation7 + $0xd8] sm:$0xff]  ;;  %v1118_v8 = vld [vmem:[%s1984_s4] ss:$0 sm:$0xff] }
  0x71   :  { %1303 = vmatpush3.bf16.msra.mxu0 %v1302_v28  ;;  %v436_v28 = vld [vmem:[#allocation7 + $0x38] sm:$0xff]  ;;  %v398_v17 = vld [vmem:[#allocation6 + $0x8] sm:$0xff]  ;;  %v629_v22 = vld [vmem:[#allocation9] sm:$0xff] }
  0x72   :  { %1304 = vmatprep.subr.bf16.mxu0 %v1769_v0  ;;  %v1362_v30 = vpack.c.bf16 %v436_v28, %v434_v27  ;;  %v630_v20 = vld [vmem:[#allocation9 + $0x8] sm:$0xff]  ;;  %v631_v24 = vld [vmem:[#allocation9 + $0x10] sm:$0xff]  ;;  %v636_v26 = vld [vmem:[#allocation9 + $0x38] sm:$0xff] }
  0x73   :  { %1327 = vmatpush3.bf16.msra.mxu1 %v1326_v45  ;;  %v446_v45 = vld [vmem:[#allocation7 + $0x88] sm:$0xff]  ;;  %v1424_v27 = vpack.c.bf16 %v631_v24, %v629_v22  ;;  %v399_v22 = vld [vmem:[#allocation6 + $0x10] sm:$0xff] }
  0x74   :  { %1328 = vmatprep.subr.bf16.mxu1 %v1769_v0  ;;  %v1374_v48 = vpack.c.bf16 %v448_v46, %v446_v45  ;;  %v402_v24 = vld [vmem:[#allocation6 + $0x28] sm:$0xff] }
  0x75   :  { %1306 = vmatpush3.bf16.msra.mxu0 %v1305_v31  ;;  %v433_v31 = vld [vmem:[#allocation7 + $0x20] sm:$0xff] }
  0x76   :  { %1307 = vmatprep.subr.bf16.mxu0 %v1769_v0  ;;  %v1364_v36 = vpack.c.bf16 %v435_v32, %v433_v31  ;;  %v638_v31 = vld [vmem:[#allocation9 + $0x48] sm:$0xff]  ;;  %v640_v32 = vld [vmem:[#allocation9 + $0x58] sm:$0xff] }
  0x77   :  { %1330 = vmatpush3.bf16.msra.mxu1 %v1329_v47  ;;  %v1372_v47 = vpack.c.bf16 %v443_v44, %v441_v43  ;;  %v646_v43 = vld [vmem:[#allocation9 + $0x88] sm:$0xff]  ;;  %v648_v44 = vld [vmem:[#allocation9 + $0x98] sm:$0xff] }
  0x78   :  { %1331 = vmatprep.subr.bf16.mxu1 %v1769_v0  ;;  %v1438_v46 = vpack.c.bf16 %v648_v44, %v646_v43  ;;  %v409_v43 = vld [vmem:[#allocation6 + $0x60] sm:$0xff]  ;;  %v411_v44 = vld [vmem:[#allocation6 + $0x70] sm:$0xff] }
  0x79   :  { %1309 = vmatpush3.bf16.msra.mxu0 %v1308_v34  ;;  %v440_v34 = vld [vmem:[#allocation7 + $0x58] sm:$0xff] }
  0x7a   :  { %1334 = vmatprep.subr.bf16.mxu0 %v1769_v0  ;;  %v1366_v37 = vpack.c.bf16 %v440_v34, %v438_v33  ;;  %v1430_v34 = vpack.c.bf16 %v640_v32, %v638_v31  ;;  %v401_v31 = vld [vmem:[#allocation6 + $0x20] sm:$0xff]  ;;  %v403_v32 = vld [vmem:[#allocation6 + $0x30] sm:$0xff] }
  0x7b   :  { %1333 = vmatpush3.bf16.msra.mxu1 %v1332_v50  ;;  %v447_v50 = vld [vmem:[#allocation7 + $0x90] sm:$0xff] }
  0x7c   :  { %1214 = vmatmul.mubr.f32.vlgmr.msra.gmra.mrb[0].mxu0 %v1921_v35  ;;  %1359 = vmatprep.subr.bf16.mxu1 %v1358_v25  ;;  %v1376_v53 = vpack.c.bf16 %v447_v50, %v445_v49  ;;  %v634_v25 = vld [vmem:[#allocation9 + $0x28] sm:$0xff]  ;;  %v652_v50 = vld [vmem:[#allocation9 + $0xb8] sm:$0xff] }
  0x7d   :  { %1283 = vmatprep.mubr.msk.f32.mxu0 %vm1770_vm0, %v1771_v1  ;;  %1336 = vmatpush3.bf16.msra.mxu0 %v1335_v54  ;;  %v1378_v54 = vpack.c.bf16 %v452_v52, %v450_v51  ;;  %v1426_v28 = vpack.c.bf16 %v636_v26, %v634_v25  ;;  %v650_v49 = vld [vmem:[#allocation9 + $0xa8] sm:$0xff]  ;;  %v404_v25 = vld [vmem:[#allocation6 + $0x38] sm:$0xff] }
  0x7e   :  { %1337 = vmatprep.subr.bf16.mxu0 %v1769_v0  ;;  %v1442_v52 = vpack.c.bf16 %v652_v50, %v650_v49  ;;  %v413_v49 = vld [vmem:[#allocation6 + $0x80] sm:$0xff]  ;;  %v418_v50 = vld [vmem:[#allocation6 + $0xa8] sm:$0xff] }
  0x81   :  { %1339 = vmatpush3.bf16.msra.mxu0 %v1338_v56  ;;  %v451_v56 = vld [vmem:[#allocation7 + $0xb0] sm:$0xff] }
  0x82   :  { %1340 = vmatprep.subr.bf16.mxu0 %v1769_v0 }
  0x85   :  { %1342 = vmatpush3.bf16.msra.mxu0 %v1341_v59  ;;  %v1380_v59 = vpack.c.bf16 %v451_v56, %v449_v55  ;;  %v654_v55 = vld [vmem:[#allocation9 + $0xc8] sm:$0xff]  ;;  %v656_v56 = vld [vmem:[#allocation9 + $0xd8] sm:$0xff] }
  0x86   :  { %1343 = vmatprep.subr.bf16.mxu0 %v1769_v0 }
  0x89   :  { %1345 = vmatpush3.bf16.msra.mxu0 %v1344_v9 }
  0x8a   :  { %1346 = vmatprep.subr.bf16.mxu0 %v1769_v0 }
  0x8d   :  { %1348 = vmatpush3.bf16.msra.mxu0 %v1347_v12 }
  0x8e   :  { %1349 = vmatprep.subr.bf16.mxu0 %v1769_v0 }
  0x91   :  { %1351 = vmatpush3.bf16.msra.mxu0 %v1350_v16 }
  0x92   :  { %1352 = vmatprep.subr.bf16.mxu0 %v1769_v0 }
  0x95   :  { %1354 = vmatpush3.bf16.msra.mxu0 %v1353_v18  ;;  %v400_v18 = vld [vmem:[#allocation6 + $0x18] sm:$0xff] }
  0x96   :  { %1355 = vmatprep.subr.bf16.mxu0 %v1769_v0  ;;  %v437_v0 = vld [vmem:[#allocation7 + $0x40] sm:$0xff]  ;;  %v1390_v19 = vpack.c.bf16 %v400_v18, %v398_v17  ;;  %v670_v17 = vld [vmem:[#allocation9 + $0x148] sm:$0xff]  ;;  %v672_v18 = vld [vmem:[#allocation9 + $0x158] sm:$0xff] }
  0x97   :  { %v1368_v41 = vpack.c.bf16 %v439_v38, %v437_v0  ;;  %v642_v0 = vld [vmem:[#allocation9 + $0x68] sm:$0xff]  ;;  %v644_v38 = vld [vmem:[#allocation9 + $0x78] sm:$0xff] }
  0x98   :  { %v1434_v40 = vpack.c.bf16 %v644_v38, %v642_v0  ;;  %v405_v0 = vld [vmem:[#allocation6 + $0x40] sm:$0xff]  ;;  %v407_v38 = vld [vmem:[#allocation6 + $0x50] sm:$0xff] }
  0x99   :  { %1357 = vmatpush3.bf16.msra.mxu0 %v1356_v21  ;;  %v632_v21 = vld [vmem:[#allocation9 + $0x18] sm:$0xff] }
  0x9a   :  { %v1422_v23 = vpack.c.bf16 %v632_v21, %v630_v20  ;;  %v1462_v20 = vpack.c.bf16 %v672_v18, %v670_v17  ;;  %v397_v21 = vld [vmem:[#allocation6] sm:$0xff]  ;;  %v680_v17 = vld [vmem:[#allocation9 + $0x198] sm:$0xff] }
  0x9c   :  { %1423 = vmatprep.subr.bf16.mxu0 %v1422_v23  ;;  %v1121_v23 = vld [vmem:[%s1984_s4 + $0x1] ss:$0 sm:$0xff] }
 0x14f   :  { %v193_v61 = vpop.f32.mrb[0].mxu0 }
 0x150   :  { %v194_v62 = vadd.f32 %v1116_v60, %v193_v61  ;;  %v1215_v63 = vpop.f32.mrb[1].mxu0  ;;  %v1382_v60 = vpack.c.bf16 %v456_v58, %v454_v57  ;;  %v453_v61 = vld [vmem:[#allocation7 + $0xc0] sm:$0xff]  ;;  %v1446_v58 = vpack.c.bf16 %v656_v56, %v654_v55  ;;  %v419_v55 = vld [vmem:[#allocation6 + $0xb0] sm:$0xff]  ;;  %v422_v56 = vld [vmem:[#allocation6 + $0xc8] sm:$0xff] }
 0x151   :  { %v458_v63 = vld [vmem:[#allocation7 + $0xe8] sm:$0xff] }
 0x152   :  { %v198_v2 = vmin.f32 %v194_v62, 0.0  ;;  %vm197_vm1 = vcmp.gt.f32.partialorder %v194_v62, 0.0 }
 0x154   :  { %v199_v3 = vmul.f32 1.442695, %v198_v2  ;;  %v460_v2 = vld [vmem:[#allocation7 + $0xf8] sm:$0xff] }
 0x156   :  { %1628 = vpow2.f32 %v199_v3 }
 0x160   :  { %v1629_v4 = vpop.eup %1628 }
 0x161   :  { %v1117_v5 = vadd.f32 -1.0, %v1629_v4  ;;  %v1386_v4 = vpack.c.bf16 %v460_v2, %v458_v63 }
 0x163   :  { %v202_v6 = vsel %vm197_vm1, %v194_v62, %v1117_v5  ;;  %v455_v62 = vld [vmem:[#allocation7 + $0xd0] sm:$0xff]  ;;  %v457_v5 = vld [vmem:[#allocation7 + $0xe0] sm:$0xff] }
 0x164   :  { %1249 = vmatmul.mubr.f32.vlgmr.msra.gmra.mrb[0].mxu1 %v202_v6  ;;  %v1384_v3 = vpack.c.bf16 %v455_v62, %v453_v61  ;;  %v459_v6 = vld [vmem:[#allocation7 + $0xf0] sm:$0xff]  ;;  %v658_v61 = vld [vmem:[#allocation9 + $0xe8] sm:$0xff]  ;;  %v660_v62 = vld [vmem:[#allocation9 + $0xf8] sm:$0xff] }
 0x165   :  { %525 = vmatprep.mubr.f32.mxu1 %v1771_v1  ;;  %1361 = vmatpush1.bf16.msra.mxu1 %v1360_v29  ;;  %v1388_v7 = vpack.c.bf16 %v459_v6, %v457_v5  ;;  %v633_v29 = vld [vmem:[#allocation9 + $0x20] sm:$0xff]  ;;  %v1450_v2 = vpack.c.bf16 %v660_v62, %v658_v61  ;;  %v662_v5 = vld [vmem:[#allocation9 + $0x108] sm:$0xff]  ;;  %v664_v6 = vld [vmem:[#allocation9 + $0x118] sm:$0xff] }
 0x166   :  { %1363 = vmatprep.subr.bf16.mxu1 %v1362_v30  ;;  %v635_v30 = vld [vmem:[#allocation9 + $0x30] sm:$0xff]  ;;  %v426_v62 = vld [vmem:[#allocation6 + $0xe8] sm:$0xff] }
 0x167   :  { %v1428_v33 = vpack.c.bf16 %v635_v30, %v633_v29  ;;  %v1394_v30 = vpack.c.bf16 %v404_v25, %v402_v24  ;;  %v423_v61 = vld [vmem:[#allocation6 + $0xd0] sm:$0xff] }
 0x168   :  { %v683_v25 = vld [vmem:[#allocation9 + $0x1b0] sm:$0xff] }
 0x169   :  { %1365 = vmatpush1.bf16.msra.mxu1 %v1364_v36  ;;  %v637_v36 = vld [vmem:[#allocation9 + $0x40] sm:$0xff] }
 0x16a   :  { %1367 = vmatprep.subr.bf16.mxu1 %v1366_v37  ;;  %v639_v37 = vld [vmem:[#allocation9 + $0x50] sm:$0xff] }
 0x16b   :  { %v1432_v39 = vpack.c.bf16 %v639_v37, %v637_v36  ;;  %v1396_v36 = vpack.c.bf16 %v403_v32, %v401_v31  ;;  %v687_v31 = vld [vmem:[#allocation9 + $0x1d0] sm:$0xff]  ;;  %v690_v32 = vld [vmem:[#allocation9 + $0x1e8] sm:$0xff] }
 0x16d   :  { %1369 = vmatpush1.bf16.msra.mxu1 %v1368_v41  ;;  %v641_v41 = vld [vmem:[#allocation9 + $0x60] sm:$0xff] }
 0x16e   :  { %1371 = vmatprep.subr.bf16.mxu1 %v1370_v42  ;;  %v643_v42 = vld [vmem:[#allocation9 + $0x70] sm:$0xff] }
 0x16f   :  { %v1436_v45 = vpack.c.bf16 %v643_v42, %v641_v41  ;;  %v1400_v41 = vpack.c.bf16 %v407_v38, %v405_v0  ;;  %v691_v0 = vld [vmem:[#allocation9 + $0x1f0] sm:$0xff] }
 0x171   :  { %1373 = vmatpush1.bf16.msra.mxu1 %v1372_v47  ;;  %v645_v47 = vld [vmem:[#allocation9 + $0x80] sm:$0xff] }
 0x172   :  { %1375 = vmatprep.subr.bf16.mxu1 %v1374_v48  ;;  %v647_v48 = vld [vmem:[#allocation9 + $0x90] sm:$0xff] }
 0x173   :  { %v1440_v51 = vpack.c.bf16 %v647_v48, %v645_v47  ;;  %v1404_v47 = vpack.c.bf16 %v411_v44, %v409_v43  ;;  %v791_v43 = vld [vmem:[#allocation9 + $0x210] sm:$0xff]  ;;  %v794_v44 = vld [vmem:[#allocation9 + $0x228] sm:$0xff] }
 0x175   :  { %1377 = vmatpush1.bf16.msra.mxu1 %v1376_v53  ;;  %v649_v53 = vld [vmem:[#allocation9 + $0xa0] sm:$0xff] }
 0x176   :  { %1379 = vmatprep.subr.bf16.mxu1 %v1378_v54  ;;  %v651_v54 = vld [vmem:[#allocation9 + $0xb0] sm:$0xff] }
 0x177   :  { %v1444_v57 = vpack.c.bf16 %v651_v54, %v649_v53  ;;  %v417_v54 = vld [vmem:[#allocation6 + $0xa0] sm:$0xff] }
 0x179   :  { %1381 = vmatpush1.bf16.msra.mxu1 %v1380_v59  ;;  %v653_v59 = vld [vmem:[#allocation9 + $0xc0] sm:$0xff] }
 0x17a   :  { %1383 = vmatprep.subr.bf16.mxu1 %v1382_v60  ;;  %v655_v60 = vld [vmem:[#allocation9 + $0xd0] sm:$0xff] }
 0x17b   :  { %v1448_v63 = vpack.c.bf16 %v655_v60, %v653_v59  ;;  %v421_v60 = vld [vmem:[#allocation6 + $0xc0] sm:$0xff] }
 0x17d   :  { %1385 = vmatpush1.bf16.msra.mxu1 %v1384_v3  ;;  %v657_v3 = vld [vmem:[#allocation9 + $0xe0] sm:$0xff] }
 0x17e   :  { %1387 = vmatprep.subr.bf16.mxu1 %v1386_v4  ;;  %v659_v4 = vld [vmem:[#allocation9 + $0xf0] sm:$0xff] }
 0x181   :  { %1389 = vmatpush1.bf16.msra.mxu1 %v1388_v7  ;;  %v1452_v7 = vpack.c.bf16 %v659_v4, %v657_v3  ;;  %v425_v4 = vld [vmem:[#allocation6 + $0xe0] sm:$0xff] }
 0x182   :  { %1391 = vmatprep.subr.bf16.mxu1 %v1390_v19 }
 0x237   :  { %v292_v9 = vpop.f32.mrb[0].mxu1 }
 0x238   :  { %v293_v10 = vadd.f32 %v1118_v8, %v292_v9  ;;  %v1250_v11 = vpop.f32.mrb[1].mxu1  ;;  %v1454_v8 = vpack.c.bf16 %v664_v6, %v662_v5  ;;  %v661_v9 = vld [vmem:[#allocation9 + $0x100] sm:$0xff]  ;;  %v427_v5 = vld [vmem:[#allocation6 + $0xf0] sm:$0xff] }
 0x239   :  { %v666_v11 = vld [vmem:[#allocation9 + $0x128] sm:$0xff]  ;;  %v1420_v6 = vpack.c.bf16 %v427_v5, %v425_v4  ;;  %v807_v4 = vld [vmem:[#allocation9 + $0x290] sm:$0xff] }
 0x23a   :  { %v297_v12 = vmin.f32 %v293_v10, 0.0  ;;  %vm296_vm2 = vcmp.gt.f32.partialorder %v293_v10, 0.0  ;;  %v810_v5 = vld [vmem:[#allocation9 + $0x2a8] sm:$0xff] }
 0x23c   :  { %v298_v13 = vmul.f32 1.442695, %v297_v12  ;;  %v668_v12 = vld [vmem:[#allocation9 + $0x138] sm:$0xff] }
 0x23e   :  { %1630 = vpow2.f32 %v298_v13 }
 0x248   :  { %v1631_v14 = vpop.eup %1630 }
 0x249   :  { %v1119_v15 = vadd.f32 -1.0, %v1631_v14  ;;  %v1458_v14 = vpack.c.bf16 %v668_v12, %v666_v11  ;;  %v676_v11 = vld [vmem:[#allocation9 + $0x178] sm:$0xff] }
 0x24b   :  { %v301_v16 = vsel %vm296_vm2, %v293_v10, %v1119_v15  ;;  %v663_v10 = vld [vmem:[#allocation9 + $0x110] sm:$0xff]  ;;  %v665_v15 = vld [vmem:[#allocation9 + $0x120] sm:$0xff] }
 0x24c   :  { %1284 = vmatmul.mubr.f32.vlgmr.msra.gmra.mrb[2].mxu0 %v301_v16  ;;  %v1456_v13 = vpack.c.bf16 %v663_v10, %v661_v9  ;;  %v667_v16 = vld [vmem:[#allocation9 + $0x130] sm:$0xff]  ;;  %v674_v10 = vld [vmem:[#allocation9 + $0x168] sm:$0xff] }
 0x24d   :  { %1425 = vmatpush1.bf16.msra.mxu0 %v1424_v27  ;;  %v1460_v19 = vpack.c.bf16 %v667_v16, %v665_v15  ;;  %v1392_v27 = vpack.c.bf16 %v399_v22, %v397_v21  ;;  %v1466_v12 = vpack.c.bf16 %v676_v11, %v674_v10  ;;  %v678_v16 = vld [vmem:[#allocation9 + $0x188] sm:$0xff]  ;;  %v684_v22 = vld [vmem:[#allocation9 + $0x1b8] sm:$0xff]  ;;  %v811_v10 = vld [vmem:[#allocation9 + $0x2b0] sm:$0xff] }
 0x24e   :  { %1427 = vmatprep.subr.bf16.mxu0 %v1426_v28  ;;  %v1470_v18 = vpack.c.bf16 %v680_v17, %v678_v16  ;;  %v814_v11 = vld [vmem:[#allocation9 + $0x2c8] sm:$0xff]  ;;  %v815_v16 = vld [vmem:[#allocation9 + $0x2d0] sm:$0xff] }
 0x24f   :  { %v818_v17 = vld [vmem:[#allocation9 + $0x2e8] sm:$0xff] }
 0x251   :  { %1429 = vmatpush1.bf16.msra.mxu0 %v1428_v33  ;;  %v406_v33 = vld [vmem:[#allocation6 + $0x48] sm:$0xff] }
 0x252   :  { %1431 = vmatprep.subr.bf16.mxu0 %v1430_v34  ;;  %v408_v34 = vld [vmem:[#allocation6 + $0x58] sm:$0xff] }
 0x253   :  { %v1398_v37 = vpack.c.bf16 %v408_v34, %v406_v33  ;;  %v692_v33 = vld [vmem:[#allocation9 + $0x1f8] sm:$0xff] }
 0x255   :  { %1433 = vmatpush1.bf16.msra.mxu0 %v1432_v39  ;;  %v410_v39 = vld [vmem:[#allocation6 + $0x68] sm:$0xff] }
 0x256   :  { %1435 = vmatprep.subr.bf16.mxu0 %v1434_v40  ;;  %v412_v40 = vld [vmem:[#allocation6 + $0x78] sm:$0xff] }
 0x257   :  { %v1402_v42 = vpack.c.bf16 %v412_v40, %v410_v39  ;;  %v790_v39 = vld [vmem:[#allocation9 + $0x208] sm:$0xff]  ;;  %v792_v40 = vld [vmem:[#allocation9 + $0x218] sm:$0xff] }
 0x259   :  { %1437 = vmatpush1.bf16.msra.mxu0 %v1436_v45  ;;  %v414_v45 = vld [vmem:[#allocation6 + $0x88] sm:$0xff] }
 0x25a   :  { %1439 = vmatprep.subr.bf16.mxu0 %v1438_v46  ;;  %v416_v46 = vld [vmem:[#allocation6 + $0x98] sm:$0xff] }
 0x25b   :  { %v1406_v48 = vpack.c.bf16 %v416_v46, %v414_v45  ;;  %v796_v45 = vld [vmem:[#allocation9 + $0x238] sm:$0xff] }
 0x25d   :  { %1441 = vmatpush1.bf16.msra.mxu0 %v1440_v51  ;;  %v420_v51 = vld [vmem:[#allocation6 + $0xb8] sm:$0xff] }
 0x25e   :  { %1443 = vmatprep.subr.bf16.mxu0 %v1442_v52  ;;  %v1410_v53 = vpack.c.bf16 %v420_v51, %v418_v50  ;;  %v800_v50 = vld [vmem:[#allocation9 + $0x258] sm:$0xff] }
 0x261   :  { %1445 = vmatpush1.bf16.msra.mxu0 %v1444_v57  ;;  %v424_v57 = vld [vmem:[#allocation6 + $0xd8] sm:$0xff] }
 0x262   :  { %1447 = vmatprep.subr.bf16.mxu0 %v1446_v58  ;;  %v1412_v58 = vpack.c.bf16 %v419_v55, %v417_v54  ;;  %v1414_v59 = vpack.c.bf16 %v424_v57, %v422_v56  ;;  %v799_v54 = vld [vmem:[#allocation9 + $0x250] sm:$0xff]  ;;  %v802_v55 = vld [vmem:[#allocation9 + $0x268] sm:$0xff]  ;;  %v804_v56 = vld [vmem:[#allocation9 + $0x278] sm:$0xff] }
 0x265   :  { %1449 = vmatpush1.bf16.msra.mxu0 %v1448_v63  ;;  %v428_v63 = vld [vmem:[#allocation6 + $0xf8] sm:$0xff] }
 0x266   :  { %1451 = vmatprep.subr.bf16.mxu0 %v1450_v2  ;;  %v1416_v2 = vpack.c.bf16 %v423_v61, %v421_v60  ;;  %v1418_v3 = vpack.c.bf16 %v428_v63, %v426_v62  ;;  %v803_v60 = vld [vmem:[#allocation9 + $0x270] sm:$0xff]  ;;  %v806_v61 = vld [vmem:[#allocation9 + $0x288] sm:$0xff]  ;;  %v808_v62 = vld [vmem:[#allocation9 + $0x298] sm:$0xff] }
 0x269   :  { %1453 = vmatpush1.bf16.msra.mxu0 %v1452_v7  ;;  %v669_v7 = vld [vmem:[#allocation9 + $0x140] sm:$0xff] }
 0x26a   :  { %1455 = vmatprep.subr.bf16.mxu0 %v1454_v8  ;;  %v671_v8 = vld [vmem:[#allocation9 + $0x150] sm:$0xff] }
 0x26b   :  { %v1464_v9 = vpack.c.bf16 %v671_v8, %v669_v7 }
 0x26d   :  { %1457 = vmatpush1.bf16.msra.mxu0 %v1456_v13  ;;  %v673_v13 = vld [vmem:[#allocation9 + $0x160] sm:$0xff] }
 0x26e   :  { %1459 = vmatprep.subr.bf16.mxu0 %v1458_v14  ;;  %v675_v14 = vld [vmem:[#allocation9 + $0x170] sm:$0xff] }
 0x26f   :  { %v1468_v15 = vpack.c.bf16 %v675_v14, %v673_v13 }
 0x271   :  { %1461 = vmatpush1.bf16.msra.mxu0 %v1460_v19  ;;  %v677_v19 = vld [vmem:[#allocation9 + $0x180] sm:$0xff] }
 0x272   :  { %1463 = vmatprep.subr.bf16.mxu0 %v1462_v20  ;;  %v679_v20 = vld [vmem:[#allocation9 + $0x190] sm:$0xff] }
 0x273   :  { %v1472_v21 = vpack.c.bf16 %v679_v20, %v677_v19 }
 0x275   :  { %1465 = vmatpush1.bf16.msra.mxu0 %v1464_v9  ;;  %v809_v9 = vld [vmem:[#allocation9 + $0x2a0] sm:$0xff] }
 0x276   :  { %1467 = vmatprep.subr.bf16.mxu0 %v1466_v12  ;;  %v816_v12 = vld [vmem:[#allocation9 + $0x2d8] sm:$0xff]  ;;  %v1508_v13 = vpack.c.bf16 %v811_v10, %v809_v9  ;;  %v839_v9 = vld [vmem:[#allocation9 + $0x390] sm:$0xff] }
 0x277   :  { %v1510_v14 = vpack.c.bf16 %v816_v12, %v814_v11  ;;  %v842_v11 = vld [vmem:[#allocation9 + $0x3a8] sm:$0xff]  ;;  %v844_v12 = vld [vmem:[#allocation9 + $0x3b8] sm:$0xff] }
 0x279   :  { %1469 = vmatpush1.bf16.msra.mxu0 %v1468_v15  ;;  %v813_v15 = vld [vmem:[#allocation9 + $0x2c0] sm:$0xff] }
 0x27a   :  { %1471 = vmatprep.subr.bf16.mxu0 %v1470_v18  ;;  %v820_v18 = vld [vmem:[#allocation9 + $0x2f8] sm:$0xff]  ;;  %v1512_v19 = vpack.c.bf16 %v815_v16, %v813_v15  ;;  %v843_v15 = vld [vmem:[#allocation9 + $0x3b0] sm:$0xff]  ;;  %v846_v16 = vld [vmem:[#allocation9 + $0x3c8] sm:$0xff] }
 0x27b   :  { %v1514_v20 = vpack.c.bf16 %v820_v18, %v818_v17  ;;  %v848_v17 = vld [vmem:[#allocation9 + $0x3d8] sm:$0xff] }
 0x27d   :  { %1473 = vmatpush1.bf16.msra.mxu0 %v1472_v21  ;;  %v817_v21 = vld [vmem:[#allocation9 + $0x2e0] sm:$0xff] }
 0x31f   :  { %v393_v26 = vpop.f32.mrb[2].mxu0 }
 0x320   :  { %v394_v28 = vadd.f32 %v1121_v23, %v393_v26  ;;  %v1285_v29 = vpop.f32.mrb[3].mxu0  ;;  %v681_v23 = vld [vmem:[#allocation9 + $0x1a0] sm:$0xff]  ;;  %v686_v26 = vld [vmem:[#allocation9 + $0x1c8] sm:$0xff] }
 0x322   :  { %526 = vmatmul.mubr.f32.vlgmr.msra.gmra.mrb[2].mxu1 %v394_v28  ;;  %v1476_v28 = vpack.c.bf16 %v683_v25, %v681_v23  ;;  %v824_v23 = vld [vmem:[#allocation9 + $0x318] sm:$0xff] }
 0x323   :  { %1393 = vmatpush1.bf16.msra.mxu1 %v1392_v27  ;;  %596 = vmatprep.mubr.f32.mxu1 %v1771_v1  ;;  %v415_v1 = vld [vmem:[#allocation6 + $0x90] sm:$0xff]  ;;  %v688_v27 = vld [vmem:[#allocation9 + $0x1d8] sm:$0xff] }
 0x324   :  { %1395 = vmatprep.subr.bf16.mxu1 %v1394_v30  ;;  %v1408_v52 = vpack.c.bf16 %v415_v1, %v413_v49  ;;  %v1478_v29 = vpack.c.bf16 %v688_v27, %v686_v26  ;;  %v685_v30 = vld [vmem:[#allocation9 + $0x1c0] sm:$0xff]  ;;  %v795_v49 = vld [vmem:[#allocation9 + $0x230] sm:$0xff]  ;;  %v798_v1 = vld [vmem:[#allocation9 + $0x248] sm:$0xff] }
 0x325   :  { %v1480_v34 = vpack.c.bf16 %v687_v31, %v685_v30  ;;  %v821_v26 = vld [vmem:[#allocation9 + $0x300] sm:$0xff]  ;;  %v823_v27 = vld [vmem:[#allocation9 + $0x310] sm:$0xff] }
 0x326   :  { %v1520_v30 = vpack.c.bf16 %v823_v27, %v821_v26  ;;  %v851_v26 = vld [vmem:[#allocation9 + $0x3f0] sm:$0xff] }
 0x327   :  { %1397 = vmatpush1.bf16.msra.mxu1 %v1396_v36  ;;  %v1482_v36 = vpack.c.bf16 %v692_v33, %v690_v32  ;;  %v825_v32 = vld [vmem:[#allocation9 + $0x320] sm:$0xff]  ;;  %v827_v33 = vld [vmem:[#allocation9 + $0x330] sm:$0xff] }
 0x328   :  { %1399 = vmatprep.subr.bf16.mxu1 %v1398_v37  ;;  %v689_v37 = vld [vmem:[#allocation9 + $0x1e0] sm:$0xff] }
 0x329   :  { %v1484_v38 = vpack.c.bf16 %v691_v0, %v689_v37  ;;  %v1524_v37 = vpack.c.bf16 %v827_v33, %v825_v32  ;;  %v961_v32 = vld [vmem:[#allocation9 + $0x410] sm:$0xff]  ;;  %v964_v33 = vld [vmem:[#allocation9 + $0x428] sm:$0xff] }
 0x32b   :  { %1401 = vmatpush1.bf16.msra.mxu1 %v1400_v41  ;;  %v789_v41 = vld [vmem:[#allocation9 + $0x200] sm:$0xff] }
 0x32c   :  { %1403 = vmatprep.subr.bf16.mxu1 %v1402_v42  ;;  %v1486_v42 = vpack.c.bf16 %v792_v40, %v790_v39  ;;  %v1488_v46 = vpack.c.bf16 %v791_v43, %v789_v41  ;;  %v603_v41 = vld [vmem:[%s1987_s7] sm:$0x3] }
 0x32f   :  { %1405 = vmatpush1.bf16.msra.mxu1 %v1404_v47  ;;  %v1490_v47 = vpack.c.bf16 %v796_v45, %v794_v44 }
 0x330   :  { %1407 = vmatprep.subr.bf16.mxu1 %v1406_v48  ;;  %v793_v48 = vld [vmem:[#allocation9 + $0x220] sm:$0xff] }
 0x331   :  { %v1492_v51 = vpack.c.bf16 %v795_v49, %v793_v48 }
 0x333   :  { %1409 = vmatpush1.bf16.msra.mxu1 %v1408_v52  ;;  %v1494_v52 = vpack.c.bf16 %v800_v50, %v798_v1 }
 0x334   :  { %1411 = vmatprep.subr.bf16.mxu1 %v1410_v53  ;;  %v797_v53 = vld [vmem:[#allocation9 + $0x240] sm:$0xff] }
 0x335   :  { %v1496_v57 = vpack.c.bf16 %v799_v54, %v797_v53 }
 0x337   :  { %1413 = vmatpush1.bf16.msra.mxu1 %v1412_v58  ;;  %v1498_v58 = vpack.c.bf16 %v804_v56, %v802_v55 }
 0x338   :  { %1415 = vmatprep.subr.bf16.mxu1 %v1414_v59  ;;  %v801_v59 = vld [vmem:[#allocation9 + $0x260] sm:$0xff] }
 0x339   :  { %v1500_v63 = vpack.c.bf16 %v803_v60, %v801_v59  ;;  %v831_v59 = vld [vmem:[#allocation9 + $0x350] sm:$0xff] }
 0x33b   :  { %1417 = vmatpush1.bf16.msra.mxu1 %v1416_v2  ;;  %v1502_v2 = vpack.c.bf16 %v808_v62, %v806_v61  ;;  %v834_v61 = vld [vmem:[#allocation9 + $0x368] sm:$0xff]  ;;  %v836_v62 = vld [vmem:[#allocation9 + $0x378] sm:$0xff] }
 0x33c   :  { %1419 = vmatprep.subr.bf16.mxu1 %v1418_v3  ;;  %v805_v3 = vld [vmem:[#allocation9 + $0x280] sm:$0xff] }
 0x33d   :  { %v1504_v7 = vpack.c.bf16 %v807_v4, %v805_v3  ;;  %v835_v3 = vld [vmem:[#allocation9 + $0x370] sm:$0xff] }
 0x33f   :  { %1421 = vmatpush1.bf16.msra.mxu1 %v1420_v6  ;;  %v812_v6 = vld [vmem:[#allocation9 + $0x2b8] sm:$0xff] }
 0x340   :  { %1487 = vmatprep.subr.bf16.mxu1 %v1486_v42  ;;  %v1506_v8 = vpack.c.bf16 %v812_v6, %v810_v5  ;;  %v838_v5 = vld [vmem:[#allocation9 + $0x388] sm:$0xff]  ;;  %v840_v6 = vld [vmem:[#allocation9 + $0x398] sm:$0xff] }
 0x342   :  { %597 = vmatmul.mubr.f32.vlgmr.msra.gmra.mrb[2].mxu1 %v1921_v35  ;;  %v682_v35 = vld [vmem:[#allocation9 + $0x1a8] sm:$0xff] }
 0x343   :  { %v1474_v24 = vpack.c.bf16 %v684_v22, %v682_v35  ;;  %1489 = vmatpush1.bf16.msra.mxu1 %v1488_v46  ;;  %v819_v35 = vld [vmem:[#allocation9 + $0x2f0] sm:$0xff]  ;;  %v822_v22 = vld [vmem:[#allocation9 + $0x308] sm:$0xff] }
 0x344   :  { %1491 = vmatprep.subr.bf16.mxu1 %v1490_v47  ;;  %v1518_v25 = vpack.c.bf16 %v824_v23, %v822_v22  ;;  %v852_v22 = vld [vmem:[#allocation9 + $0x3f8] sm:$0xff] }
 0x345   :  { %1475 = vmatprep.subr.bf16.mxu0 %v1474_v24  ;;  %v1516_v24 = vpack.c.bf16 %v819_v35, %v817_v21  ;;  %v847_v21 = vld [vmem:[#allocation9 + $0x3d0] sm:$0xff]  ;;  %v850_v35 = vld [vmem:[#allocation9 + $0x3e8] sm:$0xff] }
 0x346   :  { %1477 = vmatpush1.bf16.msra.mxu0 %v1476_v28  ;;  %v826_v28 = vld [vmem:[#allocation9 + $0x328] sm:$0xff] }
 0x347   :  { %1479 = vmatprep.subr.bf16.mxu0 %v1478_v29  ;;  %1493 = vmatpush1.bf16.msra.mxu1 %v1492_v51  ;;  %v828_v29 = vld [vmem:[#allocation9 + $0x338] sm:$0xff] }
 0x348   :  { %1495 = vmatprep.subr.bf16.mxu1 %v1494_v52  ;;  %v1522_v31 = vpack.c.bf16 %v828_v29, %v826_v28  ;;  %v960_v28 = vld [vmem:[#allocation9 + $0x408] sm:$0xff]  ;;  %v962_v29 = vld [vmem:[#allocation9 + $0x418] sm:$0xff] }
 0x34a   :  { %1481 = vmatpush1.bf16.msra.mxu0 %v1480_v34  ;;  %v830_v34 = vld [vmem:[#allocation9 + $0x348] sm:$0xff] }
 0x34b   :  { %1483 = vmatprep.subr.bf16.mxu0 %v1482_v36  ;;  %1497 = vmatpush1.bf16.msra.mxu1 %v1496_v57  ;;  %v832_v36 = vld [vmem:[#allocation9 + $0x358] sm:$0xff] }
 0x34c   :  { %1499 = vmatprep.subr.bf16.mxu1 %v1498_v58  ;;  %v1526_v0 = vpack.c.bf16 %v832_v36, %v830_v34  ;;  %v829_v58 = vld [vmem:[#allocation9 + $0x340] sm:$0xff]  ;;  %v966_v34 = vld [vmem:[#allocation9 + $0x438] sm:$0xff] }
 0x34d   :  { %v1528_v60 = vpack.c.bf16 %v831_v59, %v829_v58  ;;  %v980_v58 = vld [vmem:[#allocation9 + $0x4a8] sm:$0xff]  ;;  %v982_v59 = vld [vmem:[#allocation9 + $0x4b8] sm:$0xff] }
 0x34e   :  { %1485 = vmatpush1.bf16.msra.mxu0 %v1484_v38  ;;  %v605_v38 = vlaneseq }
 0x34f   :  { %1501 = vmatpush1.bf16.msra.mxu1 %v1500_v63  ;;  %v1530_v63 = vpack.c.bf16 %v836_v62, %v834_v61  ;;  %v1570_v61 = vpack.c.bf16 %v982_v59, %v980_v58  ;;  %v979_v62 = vld [vmem:[#allocation9 + $0x4a0] sm:$0xff] }
 0x350   :  { %1503 = vmatprep.subr.bf16.mxu1 %v1502_v2  ;;  %v606_v39 = vshrl.u32 %v605_v38, 7  ;;  %v833_v2 = vld [vmem:[#allocation9 + $0x360] sm:$0xff]  ;;  %v965_v38 = vld [vmem:[#allocation9 + $0x430] sm:$0xff] }
 0x351   :  { %v1532_v4 = vpack.c.bf16 %v835_v3, %v833_v2  ;;  %v984_v2 = vld [vmem:[#allocation9 + $0x4c8] sm:$0xff]  ;;  %v986_v3 = vld [vmem:[#allocation9 + $0x4d8] sm:$0xff]  ;;  %v1007_v59 = vld [vmem:[#allocation9 + $0x580] sm:$0xff] }
 0x352   :  { %v1950_v40 = vsub.s32 0, %v606_v39  ;;  %v1955_v42 = vsub.s32 1, %v606_v39  ;;  %v968_v39 = vld [vmem:[#allocation9 + $0x448] sm:$0xff] }
 0x353   :  { %1505 = vmatpush1.bf16.msra.mxu1 %v1504_v7  ;;  %v1534_v7 = vpack.c.bf16 %v840_v6, %v838_v5  ;;  %v1574_v5 = vpack.c.bf16 %v986_v3, %v984_v2  ;;  %v983_v6 = vld [vmem:[#allocation9 + $0x4c0] sm:$0xff] }
 0x354   :  { %1507 = vmatprep.subr.bf16.mxu1 %v1506_v8  ;;  %v608_v43 = vrot.slane %v603_v41, %v1950_v40  ;;  %v612_v44 = vrot.slane %v603_v41, %v1955_v42  ;;  %v837_v8 = vld [vmem:[#allocation9 + $0x380] sm:$0xff]  ;;  %v970_v41 = vld [vmem:[#allocation9 + $0x458] sm:$0xff] }
 0x355   :  { %v1536_v10 = vpack.c.bf16 %v839_v9, %v837_v8  ;;  %v988_v8 = vld [vmem:[#allocation9 + $0x4e8] sm:$0xff]  ;;  %v990_v9 = vld [vmem:[#allocation9 + $0x4f8] sm:$0xff]  ;;  %v1011_v2 = vld [vmem:[#allocation9 + $0x5a0] sm:$0xff] }
 0x357   :  { %1509 = vmatpush1.bf16.msra.mxu1 %v1508_v13  ;;  %v841_v13 = vld [vmem:[#allocation9 + $0x3a0] sm:$0xff] }
 0x358   :  { %1511 = vmatprep.subr.bf16.mxu1 %v1510_v14  ;;  %v1538_v14 = vpack.c.bf16 %v844_v12, %v842_v11  ;;  %v1540_v18 = vpack.c.bf16 %v843_v15, %v841_v13  ;;  %v1578_v11 = vpack.c.bf16 %v990_v9, %v988_v8  ;;  %v987_v12 = vld [vmem:[#allocation9 + $0x4e0] sm:$0xff]  ;;  %v989_v13 = vld [vmem:[#allocation9 + $0x4f0] sm:$0xff]  ;;  %v994_v15 = vld [vmem:[#allocation9 + $0x518] sm:$0xff] }
 0x359   :  { %v1015_v9 = vld [vmem:[#allocation9 + $0x5c0] sm:$0xff] }
 0x35b   :  { %1513 = vmatpush1.bf16.msra.mxu1 %v1512_v19  ;;  %v1542_v19 = vpack.c.bf16 %v848_v17, %v846_v16  ;;  %v1580_v16 = vpack.c.bf16 %v989_v13, %v987_v12  ;;  %v1022_v12 = vld [vmem:[#allocation9 + $0x5f8] sm:$0xff] }
 0x35c   :  { %1515 = vmatprep.subr.bf16.mxu1 %v1514_v20  ;;  %v845_v20 = vld [vmem:[#allocation9 + $0x3c0] sm:$0xff] }
 0x35d   :  { %v1544_v23 = vpack.c.bf16 %v847_v21, %v845_v20  ;;  %v996_v20 = vld [vmem:[#allocation9 + $0x528] sm:$0xff]  ;;  %v998_v21 = vld [vmem:[#allocation9 + $0x538] sm:$0xff] }
 0x35f   :  { %1517 = vmatpush1.bf16.msra.mxu1 %v1516_v24  ;;  %v1546_v24 = vpack.c.bf16 %v852_v22, %v850_v35  ;;  %v1586_v22 = vpack.c.bf16 %v998_v21, %v996_v20 }
 0x360   :  { %1519 = vmatprep.subr.bf16.mxu1 %v1518_v25  ;;  %v849_v25 = vld [vmem:[#allocation9 + $0x3e0] sm:$0xff] }
 0x361   :  { %v1548_v27 = vpack.c.bf16 %v851_v26, %v849_v25  ;;  %v1000_v25 = vld [vmem:[#allocation9 + $0x548] sm:$0xff]  ;;  %v1002_v26 = vld [vmem:[#allocation9 + $0x558] sm:$0xff] }
 0x363   :  { %1521 = vmatpush1.bf16.msra.mxu1 %v1520_v30  ;;  %v959_v30 = vld [vmem:[#allocation9 + $0x400] sm:$0xff] }
 0x364   :  { %1523 = vmatprep.subr.bf16.mxu1 %v1522_v31  ;;  %v1550_v31 = vpack.c.bf16 %v962_v29, %v960_v28  ;;  %v1552_v36 = vpack.c.bf16 %v961_v32, %v959_v30  ;;  %v1590_v28 = vpack.c.bf16 %v1002_v26, %v1000_v25  ;;  %v693_v29 = vld [vmem:[%s1989_s9] sm:$0x3] }
 0x365   :  { %v698_v30 = vrot.slane %v693_v29, %v1950_v40 }
 0x366   :  { %1551 = vmatprep.subr.bf16.mxu0 %v1550_v31  ;;  %v702_v31 = vrot.slane %v693_v29, %v1955_v42 }
 0x367   :  { %1525 = vmatpush1.bf16.msra.mxu1 %v1524_v37  ;;  %v1554_v37 = vpack.c.bf16 %v966_v34, %v964_v33 }
 0x368   :  { %1527 = vmatprep.subr.bf16.mxu1 %v1526_v0  ;;  %v963_v0 = vld [vmem:[#allocation9 + $0x420] sm:$0xff] }
 0x36b   :  { %1529 = vmatpush1.bf16.msra.mxu1 %v1528_v60 }
 0x36c   :  { %1531 = vmatprep.subr.bf16.mxu1 %v1530_v63  ;;  %v981_v63 = vld [vmem:[#allocation9 + $0x4b0] sm:$0xff] }
 0x36f   :  { %1533 = vmatpush1.bf16.msra.mxu1 %v1532_v4  ;;  %v1572_v4 = vpack.c.bf16 %v981_v63, %v979_v62  ;;  %v1012_v62 = vld [vmem:[#allocation9 + $0x5a8] sm:$0xff]  ;;  %v1014_v63 = vld [vmem:[#allocation9 + $0x5b8] sm:$0xff] }
 0x370   :  { %1535 = vmatprep.subr.bf16.mxu1 %v1534_v7  ;;  %v985_v7 = vld [vmem:[#allocation9 + $0x4d0] sm:$0xff]  ;;  %v1602_v3 = vpack.c.bf16 %v1014_v63, %v1012_v62 }
 0x373   :  { %1537 = vmatpush1.bf16.msra.mxu1 %v1536_v10  ;;  %v1576_v10 = vpack.c.bf16 %v985_v7, %v983_v6  ;;  %v1018_v6 = vld [vmem:[#allocation9 + $0x5d8] sm:$0xff] }
 0x374   :  { %1539 = vmatprep.subr.bf16.mxu1 %v1538_v14  ;;  %v992_v14 = vld [vmem:[#allocation9 + $0x508] sm:$0xff] }
 0x375   :  { %v1582_v17 = vpack.c.bf16 %v994_v15, %v992_v14  ;;  %v1019_v15 = vld [vmem:[#allocation9 + $0x5e0] sm:$0xff] }
 0x377   :  { %1541 = vmatpush1.bf16.msra.mxu1 %v1540_v18  ;;  %v991_v18 = vld [vmem:[#allocation9 + $0x500] sm:$0xff] }
 0x378   :  { %1543 = vmatprep.subr.bf16.mxu1 %v1542_v19  ;;  %v993_v19 = vld [vmem:[#allocation9 + $0x510] sm:$0xff] }
 0x379   :  { %v1584_v35 = vpack.c.bf16 %v993_v19, %v991_v18  ;;  %v1126_v18 = vld [vmem:[%s1989_s9 + $0x2] sm:$0x3] }
 0x37a   :  { %v863_v19 = vrot.slane %v1126_v18, %v1955_v42 }
 0x37b   :  { %1545 = vmatpush1.bf16.msra.mxu1 %v1544_v23  ;;  %v995_v23 = vld [vmem:[#allocation9 + $0x520] sm:$0xff] }
 0x37c   :  { %1547 = vmatprep.subr.bf16.mxu1 %v1546_v24  ;;  %v997_v24 = vld [vmem:[#allocation9 + $0x530] sm:$0xff] }
 0x37f   :  { %1549 = vmatpush1.bf16.msra.mxu1 %v1548_v27  ;;  %v1588_v27 = vpack.c.bf16 %v997_v24, %v995_v23 }
 0x415   :  { %v598_v45 = vpop.f32.mrb[2].mxu1 }
 0x416   :  { %v615_v46 = vadd.f32 %v608_v43, %v598_v45  ;;  %v600_v47 = vpop.f32.mrb[3].mxu1  ;;  %v1556_v43 = vpack.c.bf16 %v965_v38, %v963_v0  ;;  %v967_v45 = vld [vmem:[#allocation9 + $0x440] sm:$0xff] }
 0x417   :  { %v616_v48 = vadd.f32 %v612_v44, %v600_v47  ;;  %v1558_v44 = vpack.c.bf16 %v970_v41, %v968_v39  ;;  %v972_v47 = vld [vmem:[#allocation9 + $0x468] sm:$0xff] }
 0x418   :  { %v619_v49 = vmin.f32 %v615_v46, 0.0  ;;  %vm617_vm4 = vcmp.gt.f32.partialorder %v615_v46, 0.0 }
 0x419   :  { %v620_v1 = vmin.f32 %v616_v48, 0.0  ;;  %vm618_vm3 = vcmp.gt.f32.partialorder %v616_v48, 0.0 }
 0x41a   :  { %v621_v50 = vmul.f32 1.442695, %v619_v49 }
 0x41b   :  { %v623_v51 = vmul.f32 1.442695, %v620_v1 }
 0x41c   :  { %1632 = vpow2.f32 %v621_v50  ;;  %v971_v50 = vld [vmem:[#allocation9 + $0x460] sm:$0xff] }
 0x41d   :  { %1634 = vpow2.f32 %v623_v51  ;;  %v973_v51 = vld [vmem:[#allocation9 + $0x470] sm:$0xff] }
 0x426   :  { %v1633_v52 = vpop.eup %1632 }
 0x427   :  { %v1635_v53 = vpop.eup %1634  ;;  %v1122_v54 = vadd.f32 -1.0, %v1633_v52  ;;  %v976_v52 = vld [vmem:[#allocation9 + $0x488] sm:$0xff] }
 0x428   :  { %v1123_v55 = vadd.f32 -1.0, %v1635_v53  ;;  %v978_v53 = vld [vmem:[#allocation9 + $0x498] sm:$0xff] }
 0x429   :  { %v627_v57 = vsel %vm617_vm4, %v615_v46, %v1122_v54  ;;  %v969_v46 = vld [vmem:[#allocation9 + $0x450] sm:$0xff]  ;;  %v1564_v54 = vpack.c.bf16 %v973_v51, %v971_v50  ;;  %v1004_v50 = vld [vmem:[#allocation9 + $0x568] sm:$0xff]  ;;  %v1006_v51 = vld [vmem:[#allocation9 + $0x578] sm:$0xff] }
 0x42a   :  { %v628_v56 = vsel %vm618_vm3, %v616_v48, %v1123_v55  ;;  %v974_v48 = vld [vmem:[#allocation9 + $0x478] sm:$0xff]  ;;  %v1560_v49 = vpack.c.bf16 %v969_v46, %v967_v45  ;;  %v1566_v55 = vpack.c.bf16 %v978_v53, %v976_v52  ;;  %v1594_v52 = vpack.c.bf16 %v1006_v51, %v1004_v50  ;;  %v1003_v53 = vld [vmem:[#allocation9 + $0x560] sm:$0xff] }
 0x42b   :  { %769 = vmatprep.mubr.f32.mxu0 %v628_v56  ;;  %v1562_v1 = vpack.c.bf16 %v974_v48, %v972_v47  ;;  %v975_v56 = vld [vmem:[#allocation9 + $0x480] sm:$0xff] }
 0x42c   :  { %770 = vmatmul.mubr.f32.vlgmr.msra.gmra.mrb[4].mxu0 %v627_v57  ;;  %v977_v57 = vld [vmem:[#allocation9 + $0x490] sm:$0xff]  ;;  %v999_v48 = vld [vmem:[#allocation9 + $0x540] sm:$0xff] }
 0x42d   :  { %1553 = vmatpush1.bf16.msra.mxu0 %v1552_v36  ;;  %v1568_v60 = vpack.c.bf16 %v977_v57, %v975_v56  ;;  %v1008_v56 = vld [vmem:[#allocation9 + $0x588] sm:$0xff]  ;;  %v1010_v57 = vld [vmem:[#allocation9 + $0x598] sm:$0xff] }
 0x42e   :  { %1555 = vmatprep.subr.bf16.mxu0 %v1554_v37  ;;  %v1598_v58 = vpack.c.bf16 %v1010_v57, %v1008_v56 }
 0x431   :  { %1557 = vmatpush1.bf16.msra.mxu0 %v1556_v43 }
 0x432   :  { %1559 = vmatprep.subr.bf16.mxu0 %v1558_v44 }
 0x435   :  { %1561 = vmatpush1.bf16.msra.mxu0 %v1560_v49  ;;  %v1001_v49 = vld [vmem:[#allocation9 + $0x550] sm:$0xff] }
 0x436   :  { %1563 = vmatprep.subr.bf16.mxu0 %v1562_v1  ;;  %v1592_v1 = vpack.c.bf16 %v1001_v49, %v999_v48 }
 0x439   :  { %1565 = vmatpush1.bf16.msra.mxu0 %v1564_v54  ;;  %v1005_v54 = vld [vmem:[#allocation9 + $0x570] sm:$0xff] }
 0x43a   :  { %1567 = vmatprep.subr.bf16.mxu0 %v1566_v55  ;;  %v1596_v55 = vpack.c.bf16 %v1005_v54, %v1003_v53 }
 0x43d   :  { %1569 = vmatpush1.bf16.msra.mxu0 %v1568_v60  ;;  %v1009_v60 = vld [vmem:[#allocation9 + $0x590] sm:$0xff] }
 0x43e   :  { %1571 = vmatprep.subr.bf16.mxu0 %v1570_v61  ;;  %v1600_v61 = vpack.c.bf16 %v1009_v60, %v1007_v59 }
 0x441   :  { %1573 = vmatpush1.bf16.msra.mxu0 %v1572_v4  ;;  %v1013_v4 = vld [vmem:[#allocation9 + $0x5b0] sm:$0xff] }
 0x442   :  { %1575 = vmatprep.subr.bf16.mxu0 %v1574_v5  ;;  %v1016_v5 = vld [vmem:[#allocation9 + $0x5c8] sm:$0xff]  ;;  %v1604_v7 = vpack.c.bf16 %v1013_v4, %v1011_v2 }
 0x443   :  { %v1606_v8 = vpack.c.bf16 %v1018_v6, %v1016_v5 }
 0x445   :  { %1577 = vmatpush1.bf16.msra.mxu0 %v1576_v10  ;;  %v1017_v10 = vld [vmem:[#allocation9 + $0x5d0] sm:$0xff] }
 0x446   :  { %1579 = vmatprep.subr.bf16.mxu0 %v1578_v11  ;;  %v1020_v11 = vld [vmem:[#allocation9 + $0x5e8] sm:$0xff]  ;;  %v1608_v13 = vpack.c.bf16 %v1017_v10, %v1015_v9 }
 0x447   :  { %v1610_v14 = vpack.c.bf16 %v1022_v12, %v1020_v11 }
 0x449   :  { %1581 = vmatpush1.bf16.msra.mxu0 %v1580_v16  ;;  %v1021_v16 = vld [vmem:[#allocation9 + $0x5f0] sm:$0xff] }
 0x44a   :  { %1583 = vmatprep.subr.bf16.mxu0 %v1582_v17  ;;  %v1612_v17 = vpack.c.bf16 %v1021_v16, %v1019_v15 }
 0x44d   :  { %1585 = vmatpush1.bf16.msra.mxu0 %v1584_v35 }
 0x44e   :  { %1587 = vmatprep.subr.bf16.mxu0 %v1586_v22  ;;  %v859_v22 = vrot.slane %v1126_v18, %v1950_v40 }
 0x451   :  { %1589 = vmatpush1.bf16.msra.mxu0 %v1588_v27 }
 0x452   :  { %1591 = vmatprep.subr.bf16.mxu0 %v1590_v28 }
 0x455   :  { %1593 = vmatpush1.bf16.msra.mxu0 %v1592_v1 }
 0x456   :  { %1595 = vmatprep.subr.bf16.mxu0 %v1594_v52 }
 0x459   :  { %1597 = vmatpush1.bf16.msra.mxu0 %v1596_v55 }
 0x45a   :  { %1599 = vmatprep.subr.bf16.mxu0 %v1598_v58 }
 0x45d   :  { %1601 = vmatpush1.bf16.msra.mxu0 %v1600_v61 }
 0x45e   :  { %1603 = vmatprep.subr.bf16.mxu0 %v1602_v3 }
 0x461   :  { %1605 = vmatpush1.bf16.msra.mxu0 %v1604_v7 }
 0x462   :  { %1607 = vmatprep.subr.bf16.mxu0 %v1606_v8 }
 0x465   :  { %1609 = vmatpush1.bf16.msra.mxu0 %v1608_v13 }
 0x466   :  { %1611 = vmatprep.subr.bf16.mxu0 %v1610_v14 }
 0x469   :  { %1613 = vmatpush1.bf16.msra.mxu0 %v1612_v17 }
 0x4ff   :  { %v771_v32 = vpop.f32.mrb[4].mxu0 }
 0x500   :  { %v772_v33 = vadd.f32 %v771_v32, %v698_v30  ;;  %v773_v34 = vpop.f32.mrb[5].mxu0  ;;  %v1129_v30 = vld [vmem:[%s1989_s9 + $0x4] sm:$0x3] }
 0x501   :  { %v774_v36 = vadd.f32 %v773_v34, %v702_v31  ;;  %v1029_v31 = vrot.slane %v1129_v30, %v1950_v40  ;;  %v1033_v32 = vrot.slane %v1129_v30, %v1955_v42 }
 0x502   :  { %v778_v37 = vmin.f32 %v772_v33, 0.0  ;;  %vm776_vm6 = vcmp.gt.f32.partialorder %v772_v33, 0.0 }
 0x503   :  { %v779_v0 = vmin.f32 %v774_v36, 0.0  ;;  %vm777_vm5 = vcmp.gt.f32.partialorder %v774_v36, 0.0 }
 0x504   :  { %v780_v38 = vmul.f32 1.442695, %v778_v37 }
 0x505   :  { %v782_v39 = vmul.f32 1.442695, %v779_v0 }
 0x506   :  { %1636 = vpow2.f32 %v780_v38 }
 0x507   :  { %1638 = vpow2.f32 %v782_v39 }
 0x510   :  { %v1637_v41 = vpop.eup %1636 }
 0x511   :  { %v1639_v43 = vpop.eup %1638  ;;  %v1124_v44 = vadd.f32 -1.0, %v1637_v41 }
 0x512   :  { %v1125_v45 = vadd.f32 -1.0, %v1639_v43 }
 0x513   :  { %v786_v47 = vsel %vm776_vm6, %v772_v33, %v1124_v44 }
 0x514   :  { %v787_v46 = vsel %vm777_vm5, %v774_v36, %v1125_v45 }
 0x515   :  { %930 = vmatprep.mubr.f32.mxu1 %v787_v46 }
 0x516   :  { %931 = vmatmul.mubr.f32.vlgmr.msra.gmra.mrb[4].mxu1 %v786_v47 }
 0x5e9   :  { %v932_v20 = vpop.f32.mrb[4].mxu1 }
 0x5ea   :  { %v934_v21 = vpop.f32.mrb[5].mxu1  ;;  %v933_v25 = vadd.f32 %v932_v20, %v859_v22 }
 0x5eb   :  { %v935_v35 = vadd.f32 %v934_v21, %v863_v19 }
 0x5ed   :  { %v947_v23 = vmin.f32 %v935_v35, 0.0  ;;  %vm945_vm7 = vcmp.gt.f32.partialorder %v935_v35, 0.0 }
 0x5ef   :  { %v950_v24 = vmul.f32 1.442695, %v947_v23 }
 0x5f1   :  { %1640 = vpow2.f32 %v950_v24 }
 0x5f2   :  { %1642 = vtanh.f32 %v933_v25 }
 0x5fb   :  { %v1641_v26 = vpop.eup %1640 }
 0x5fc   :  { %v1128_v27 = vadd.f32 -1.0, %v1641_v26  ;;  %v1643_v29 = vpop.eup %1642 }
 0x5fe   :  { %v955_v28 = vsel %vm945_vm7, %v935_v35, %v1128_v27 }
 0x5ff   :  { %1100 = vmatprep.mubr.f32.mxu0 %v955_v28 }
 0x600   :  { %1101 = vmatmul.mubr.f32.vlgmr.msra.gmra.mrb[6].mxu0 %v1643_v29 }
 0x6d3   :  { %v1102_v33 = vpop.f32.mrb[6].mxu0 }
 0x6d4   :  { %v1103_v34 = vadd.f32 %v1102_v33, %v1029_v31  ;;  %v1104_v36 = vpop.f32.mrb[7].mxu0 }
 0x6d5   :  { %v1105_v37 = vadd.f32 %v1104_v36, %v1033_v32 }
 0x6d6   :  { %1107 = vst [vmem:[%s1990_s10] sm:$0xff] %v1103_v34 }
 0x6d7   :  { %1108 = vst [vmem:[%s1990_s10 + $0x8] sm:$0xff] %v1105_v37 }
 0x6d8   :  { %1113 = vsyncpa [#allocation3], 1 }
 0x6d9   :  { %1114 = vsyncpa [#allocation5], 1 }
 0x6da   :  { %1115 = vsyncpa [#allocation8], 1 }

</bundles_post_ra>
